<compile_context>
chip_gen: v6e
topology: v6e:2x2x1
jax: 0.10.0
libtpu: 0.0.40
codegen_flags: <defaults>
</compile_context>

<pallas_src>
import functools

import jax
import jax.numpy as jnp
from jax.experimental import pallas as pl
from jax.experimental.pallas import tpu as pltpu

KSIZE = 5
PAD = KSIZE // 2


def _esa_kernel(xp_ref, w_ref, b_ref, o_ref, *, H, W):
    """One (batch, channel-block) tile: depthwise 5x5 conv + sigmoid gate."""
    xp = xp_ref[0].astype(jnp.float32)            # (cb, H+4, W+4)
    w = w_ref[...].astype(jnp.float32)            # (cb, 5, 5)
    b = b_ref[...].astype(jnp.float32)            # (cb, 1, 1)

    x = xp[:, PAD:PAD + H, PAD:PAD + W]           # center = original input
    acc = jnp.zeros_like(x)
    for i in range(KSIZE):                        # 25 static taps, fully unrolled
        for j in range(KSIZE):
            tap = w[:, i:i + 1, j:j + 1]          # (cb, 1, 1) per-channel scalar
            acc = acc + xp[:, i:i + H, j:j + W] * tap
    z = acc + b                                   # conv output + bias
    attn = 1.0 / (1.0 + jnp.exp(-z))              # sigmoid
    o_ref[0] = (x * attn).astype(o_ref.dtype)


def efficient_spatial_attention(x, weight, bias, *, c_block=None,
                                vmem_limit_bytes=32 * 1024 * 1024):
    """EfficientSpatialAttention forward.

    x:      (B, C, H, W)
    weight: (C, 5, 5)   depthwise filters (PyTorch (C, 1, 5, 5) squeezed)
    bias:   (C,)
    """
    B, C, H, W = x.shape
    assert weight.shape == (C, KSIZE, KSIZE)
    assert bias.shape == (C,)

    if c_block is None:
        # Target roughly 2 MiB of padded input per grid step (double-buffered
        # in+out stays well under the scoped-VMEM defaults on v5e/v6e/v7x),
        # while keeping c_block an exact divisor of C.
        bytes_per_channel = (H + 2 * PAD) * (W + 2 * PAD) * x.dtype.itemsize
        target = max(1, (2 * 1024 * 1024) // bytes_per_channel)
        c_block = min(C, target)
        while C % c_block != 0:
            c_block -= 1

    # Materialize the 'same'-padding halo once (single cheap XLA pad).
    xp = jnp.pad(x, ((0, 0), (0, 0), (PAD, PAD), (PAD, PAD)))
    b3 = bias.reshape(C, 1, 1)

    kernel = functools.partial(_esa_kernel, H=H, W=W)
    return pl.pallas_call(
        kernel,
        out_shape=jax.ShapeDtypeStruct((B, C, H, W), x.dtype),
        grid_spec=pltpu.PrefetchScalarGridSpec(
            num_scalar_prefetch=0,
            grid=(B, C // c_block),
            in_specs=[
                pl.BlockSpec((1, c_block, H + 2 * PAD, W + 2 * PAD),
                             lambda b, c: (b, c, 0, 0)),
                pl.BlockSpec((c_block, KSIZE, KSIZE), lambda b, c: (c, 0, 0)),
                pl.BlockSpec((c_block, 1, 1), lambda b, c: (c, 0, 0)),
            ],
            out_specs=pl.BlockSpec((1, c_block, H, W),
                                   lambda b, c: (b, c, 0, 0)),
        ),
        compiler_params=pltpu.CompilerParams(
            dimension_semantics=("parallel", "parallel"),
            vmem_limit_bytes=vmem_limit_bytes),
    )(xp, weight, b3)


def _reference_esa(x, weight, bias):
    """Pure-JAX reference: x * sigmoid(depthwise_conv5x5(x) + bias)."""
    conv = jax.lax.conv_general_dilated(
        x.astype(jnp.float32),
        weight[:, None, :, :].astype(jnp.float32),   # (C, 1, 5, 5) OIHW
        window_strides=(1, 1),
        padding="SAME",
        dimension_numbers=("NCHW", "OIHW", "NCHW"),
        feature_group_count=x.shape[1],
        precision=jax.lax.Precision.HIGHEST)
    conv = conv + bias[None, :, None, None].astype(jnp.float32)
    return (x.astype(jnp.float32) * jax.nn.sigmoid(conv)).astype(x.dtype)


if __name__ == "__main__":
    key = jax.random.PRNGKey(0)
    kx, kw, kb = jax.random.split(key, 3)
    B, C, H, W = 2, 4, 16, 16
    x = jax.random.normal(kx, (B, C, H, W), dtype=jnp.float32)
    # Deterministic depthwise-conv parameters (nn.Conv2d weight/bias analog).
    weight = 0.1 * jax.random.normal(kw, (C, KSIZE, KSIZE), dtype=jnp.float32)
    bias = 0.1 * jax.random.normal(kb, (C,), dtype=jnp.float32)

    out = efficient_spatial_attention(x, weight, bias)
    out = jax.block_until_ready(out)

    ref = _reference_esa(x, weight, bias)
    assert out.shape == (B, C, H, W)
    assert jnp.allclose(out, ref, atol=1e-5, rtol=1e-5), (
        float(jnp.max(jnp.abs(out - ref))))

    print("KERNEL_OK")
</pallas_src>

<mosaic_0001>
module attributes {stable_mosaic.version = 11 : i64} {
  func.func @_esa_kernel(%arg0: i32, %arg1: i32, %arg2: memref<1x4x20x20xf32, #tpu.memory_space<vmem>>, %arg3: memref<4x5x5xf32, #tpu.memory_space<vmem>>, %arg4: memref<4x1x1xf32, #tpu.memory_space<vmem>>, %arg5: memref<1x4x16x16xf32, #tpu.memory_space<vmem>>) attributes {dimension_semantics = [#tpu.dimension_semantics<parallel>, #tpu.dimension_semantics<parallel>], iteration_bounds = array<i64: 2, 1>, scalar_prefetch = 0 : i64, scratch_operands = 0 : i64, tpu.core_type = #tpu.core_type<tc>, window_params = [{transform_indices = @transform_0, window_bounds = array<i64: 1, 4, 20, 20>}, {transform_indices = @transform_1, window_bounds = array<i64: 4, 5, 5>}, {transform_indices = @transform_2, window_bounds = array<i64: 4, 1, 1>}, {transform_indices = @transform_3, window_bounds = array<i64: 1, 4, 16, 16>}]} {
    %c0 = arith.constant 0 : index
    %c0_0 = arith.constant 0 : index
    %c0_1 = arith.constant 0 : index
    %c0_2 = arith.constant 0 : index
    %0 = vector.load %arg2[%c0, %c0_0, %c0_1, %c0_2] : memref<1x4x20x20xf32, #tpu.memory_space<vmem>>, vector<1x4x20x20xf32>
    %1 = vector.shape_cast %0 : vector<1x4x20x20xf32> to vector<4x20x20xf32>
    %c0_3 = arith.constant 0 : index
    %c0_4 = arith.constant 0 : index
    %c0_5 = arith.constant 0 : index
    %2 = vector.load %arg3[%c0_3, %c0_4, %c0_5] : memref<4x5x5xf32, #tpu.memory_space<vmem>>, vector<4x5x5xf32>
    %c0_6 = arith.constant 0 : index
    %c0_7 = arith.constant 0 : index
    %c0_8 = arith.constant 0 : index
    %3 = vector.load %arg4[%c0_6, %c0_7, %c0_8] : memref<4x1x1xf32, #tpu.memory_space<vmem>>, vector<4x1x1xf32>
    %4 = vector.extract_strided_slice %1 {offsets = [0, 2, 2], sizes = [4, 16, 16], strides = [1, 1, 1]} : vector<4x20x20xf32> to vector<4x16x16xf32>
    %cst = arith.constant 0.000000e+00 : f32
    %5 = vector.broadcast %cst : f32 to vector<4x16x16xf32>
    %6 = vector.extract_strided_slice %2 {offsets = [0, 0, 0], sizes = [4, 1, 1], strides = [1, 1, 1]} : vector<4x5x5xf32> to vector<4x1x1xf32>
    %7 = vector.extract_strided_slice %1 {offsets = [0, 0, 0], sizes = [4, 16, 16], strides = [1, 1, 1]} : vector<4x20x20xf32> to vector<4x16x16xf32>
    %8 = vector.broadcast %6 : vector<4x1x1xf32> to vector<4x16x16xf32>
    %9 = arith.mulf %7, %8 : vector<4x16x16xf32>
    %10 = arith.addf %5, %9 : vector<4x16x16xf32>
    %11 = vector.extract_strided_slice %2 {offsets = [0, 0, 1], sizes = [4, 1, 1], strides = [1, 1, 1]} : vector<4x5x5xf32> to vector<4x1x1xf32>
    %12 = vector.extract_strided_slice %1 {offsets = [0, 0, 1], sizes = [4, 16, 16], strides = [1, 1, 1]} : vector<4x20x20xf32> to vector<4x16x16xf32>
    %13 = vector.broadcast %11 : vector<4x1x1xf32> to vector<4x16x16xf32>
    %14 = arith.mulf %12, %13 : vector<4x16x16xf32>
    %15 = arith.addf %10, %14 : vector<4x16x16xf32>
    %16 = vector.extract_strided_slice %2 {offsets = [0, 0, 2], sizes = [4, 1, 1], strides = [1, 1, 1]} : vector<4x5x5xf32> to vector<4x1x1xf32>
    %17 = vector.extract_strided_slice %1 {offsets = [0, 0, 2], sizes = [4, 16, 16], strides = [1, 1, 1]} : vector<4x20x20xf32> to vector<4x16x16xf32>
    %18 = vector.broadcast %16 : vector<4x1x1xf32> to vector<4x16x16xf32>
    %19 = arith.mulf %17, %18 : vector<4x16x16xf32>
    %20 = arith.addf %15, %19 : vector<4x16x16xf32>
    %21 = vector.extract_strided_slice %2 {offsets = [0, 0, 3], sizes = [4, 1, 1], strides = [1, 1, 1]} : vector<4x5x5xf32> to vector<4x1x1xf32>
    %22 = vector.extract_strided_slice %1 {offsets = [0, 0, 3], sizes = [4, 16, 16], strides = [1, 1, 1]} : vector<4x20x20xf32> to vector<4x16x16xf32>
    %23 = vector.broadcast %21 : vector<4x1x1xf32> to vector<4x16x16xf32>
    %24 = arith.mulf %22, %23 : vector<4x16x16xf32>
    %25 = arith.addf %20, %24 : vector<4x16x16xf32>
    %26 = vector.extract_strided_slice %2 {offsets = [0, 0, 4], sizes = [4, 1, 1], strides = [1, 1, 1]} : vector<4x5x5xf32> to vector<4x1x1xf32>
    %27 = vector.extract_strided_slice %1 {offsets = [0, 0, 4], sizes = [4, 16, 16], strides = [1, 1, 1]} : vector<4x20x20xf32> to vector<4x16x16xf32>
    %28 = vector.broadcast %26 : vector<4x1x1xf32> to vector<4x16x16xf32>
    %29 = arith.mulf %27, %28 : vector<4x16x16xf32>
    %30 = arith.addf %25, %29 : vector<4x16x16xf32>
    %31 = vector.extract_strided_slice %2 {offsets = [0, 1, 0], sizes = [4, 1, 1], strides = [1, 1, 1]} : vector<4x5x5xf32> to vector<4x1x1xf32>
    %32 = vector.extract_strided_slice %1 {offsets = [0, 1, 0], sizes = [4, 16, 16], strides = [1, 1, 1]} : vector<4x20x20xf32> to vector<4x16x16xf32>
    %33 = vector.broadcast %31 : vector<4x1x1xf32> to vector<4x16x16xf32>
    %34 = arith.mulf %32, %33 : vector<4x16x16xf32>
    %35 = arith.addf %30, %34 : vector<4x16x16xf32>
    %36 = vector.extract_strided_slice %2 {offsets = [0, 1, 1], sizes = [4, 1, 1], strides = [1, 1, 1]} : vector<4x5x5xf32> to vector<4x1x1xf32>
    %37 = vector.extract_strided_slice %1 {offsets = [0, 1, 1], sizes = [4, 16, 16], strides = [1, 1, 1]} : vector<4x20x20xf32> to vector<4x16x16xf32>
    %38 = vector.broadcast %36 : vector<4x1x1xf32> to vector<4x16x16xf32>
    %39 = arith.mulf %37, %38 : vector<4x16x16xf32>
    %40 = arith.addf %35, %39 : vector<4x16x16xf32>
    %41 = vector.extract_strided_slice %2 {offsets = [0, 1, 2], sizes = [4, 1, 1], strides = [1, 1, 1]} : vector<4x5x5xf32> to vector<4x1x1xf32>
    %42 = vector.extract_strided_slice %1 {offsets = [0, 1, 2], sizes = [4, 16, 16], strides = [1, 1, 1]} : vector<4x20x20xf32> to vector<4x16x16xf32>
    %43 = vector.broadcast %41 : vector<4x1x1xf32> to vector<4x16x16xf32>
    %44 = arith.mulf %42, %43 : vector<4x16x16xf32>
    %45 = arith.addf %40, %44 : vector<4x16x16xf32>
    %46 = vector.extract_strided_slice %2 {offsets = [0, 1, 3], sizes = [4, 1, 1], strides = [1, 1, 1]} : vector<4x5x5xf32> to vector<4x1x1xf32>
    %47 = vector.extract_strided_slice %1 {offsets = [0, 1, 3], sizes = [4, 16, 16], strides = [1, 1, 1]} : vector<4x20x20xf32> to vector<4x16x16xf32>
    %48 = vector.broadcast %46 : vector<4x1x1xf32> to vector<4x16x16xf32>
    %49 = arith.mulf %47, %48 : vector<4x16x16xf32>
    %50 = arith.addf %45, %49 : vector<4x16x16xf32>
    %51 = vector.extract_strided_slice %2 {offsets = [0, 1, 4], sizes = [4, 1, 1], strides = [1, 1, 1]} : vector<4x5x5xf32> to vector<4x1x1xf32>
    %52 = vector.extract_strided_slice %1 {offsets = [0, 1, 4], sizes = [4, 16, 16], strides = [1, 1, 1]} : vector<4x20x20xf32> to vector<4x16x16xf32>
    %53 = vector.broadcast %51 : vector<4x1x1xf32> to vector<4x16x16xf32>
    %54 = arith.mulf %52, %53 : vector<4x16x16xf32>
    %55 = arith.addf %50, %54 : vector<4x16x16xf32>
    %56 = vector.extract_strided_slice %2 {offsets = [0, 2, 0], sizes = [4, 1, 1], strides = [1, 1, 1]} : vector<4x5x5xf32> to vector<4x1x1xf32>
    %57 = vector.extract_strided_slice %1 {offsets = [0, 2, 0], sizes = [4, 16, 16], strides = [1, 1, 1]} : vector<4x20x20xf32> to vector<4x16x16xf32>
    %58 = vector.broadcast %56 : vector<4x1x1xf32> to vector<4x16x16xf32>
    %59 = arith.mulf %57, %58 : vector<4x16x16xf32>
    %60 = arith.addf %55, %59 : vector<4x16x16xf32>
    %61 = vector.extract_strided_slice %2 {offsets = [0, 2, 1], sizes = [4, 1, 1], strides = [1, 1, 1]} : vector<4x5x5xf32> to vector<4x1x1xf32>
    %62 = vector.extract_strided_slice %1 {offsets = [0, 2, 1], sizes = [4, 16, 16], strides = [1, 1, 1]} : vector<4x20x20xf32> to vector<4x16x16xf32>
    %63 = vector.broadcast %61 : vector<4x1x1xf32> to vector<4x16x16xf32>
    %64 = arith.mulf %62, %63 : vector<4x16x16xf32>
    %65 = arith.addf %60, %64 : vector<4x16x16xf32>
    %66 = vector.extract_strided_slice %2 {offsets = [0, 2, 2], sizes = [4, 1, 1], strides = [1, 1, 1]} : vector<4x5x5xf32> to vector<4x1x1xf32>
    %67 = vector.extract_strided_slice %1 {offsets = [0, 2, 2], sizes = [4, 16, 16], strides = [1, 1, 1]} : vector<4x20x20xf32> to vector<4x16x16xf32>
    %68 = vector.broadcast %66 : vector<4x1x1xf32> to vector<4x16x16xf32>
    %69 = arith.mulf %67, %68 : vector<4x16x16xf32>
    %70 = arith.addf %65, %69 : vector<4x16x16xf32>
    %71 = vector.extract_strided_slice %2 {offsets = [0, 2, 3], sizes = [4, 1, 1], strides = [1, 1, 1]} : vector<4x5x5xf32> to vector<4x1x1xf32>
    %72 = vector.extract_strided_slice %1 {offsets = [0, 2, 3], sizes = [4, 16, 16], strides = [1, 1, 1]} : vector<4x20x20xf32> to vector<4x16x16xf32>
    %73 = vector.broadcast %71 : vector<4x1x1xf32> to vector<4x16x16xf32>
    %74 = arith.mulf %72, %73 : vector<4x16x16xf32>
    %75 = arith.addf %70, %74 : vector<4x16x16xf32>
    %76 = vector.extract_strided_slice %2 {offsets = [0, 2, 4], sizes = [4, 1, 1], strides = [1, 1, 1]} : vector<4x5x5xf32> to vector<4x1x1xf32>
    %77 = vector.extract_strided_slice %1 {offsets = [0, 2, 4], sizes = [4, 16, 16], strides = [1, 1, 1]} : vector<4x20x20xf32> to vector<4x16x16xf32>
    %78 = vector.broadcast %76 : vector<4x1x1xf32> to vector<4x16x16xf32>
    %79 = arith.mulf %77, %78 : vector<4x16x16xf32>
    %80 = arith.addf %75, %79 : vector<4x16x16xf32>
    %81 = vector.extract_strided_slice %2 {offsets = [0, 3, 0], sizes = [4, 1, 1], strides = [1, 1, 1]} : vector<4x5x5xf32> to vector<4x1x1xf32>
    %82 = vector.extract_strided_slice %1 {offsets = [0, 3, 0], sizes = [4, 16, 16], strides = [1, 1, 1]} : vector<4x20x20xf32> to vector<4x16x16xf32>
    %83 = vector.broadcast %81 : vector<4x1x1xf32> to vector<4x16x16xf32>
    %84 = arith.mulf %82, %83 : vector<4x16x16xf32>
    %85 = arith.addf %80, %84 : vector<4x16x16xf32>
    %86 = vector.extract_strided_slice %2 {offsets = [0, 3, 1], sizes = [4, 1, 1], strides = [1, 1, 1]} : vector<4x5x5xf32> to vector<4x1x1xf32>
    %87 = vector.extract_strided_slice %1 {offsets = [0, 3, 1], sizes = [4, 16, 16], strides = [1, 1, 1]} : vector<4x20x20xf32> to vector<4x16x16xf32>
    %88 = vector.broadcast %86 : vector<4x1x1xf32> to vector<4x16x16xf32>
    %89 = arith.mulf %87, %88 : vector<4x16x16xf32>
    %90 = arith.addf %85, %89 : vector<4x16x16xf32>
    %91 = vector.extract_strided_slice %2 {offsets = [0, 3, 2], sizes = [4, 1, 1], strides = [1, 1, 1]} : vector<4x5x5xf32> to vector<4x1x1xf32>
    %92 = vector.extract_strided_slice %1 {offsets = [0, 3, 2], sizes = [4, 16, 16], strides = [1, 1, 1]} : vector<4x20x20xf32> to vector<4x16x16xf32>
    %93 = vector.broadcast %91 : vector<4x1x1xf32> to vector<4x16x16xf32>
    %94 = arith.mulf %92, %93 : vector<4x16x16xf32>
    %95 = arith.addf %90, %94 : vector<4x16x16xf32>
    %96 = vector.extract_strided_slice %2 {offsets = [0, 3, 3], sizes = [4, 1, 1], strides = [1, 1, 1]} : vector<4x5x5xf32> to vector<4x1x1xf32>
    %97 = vector.extract_strided_slice %1 {offsets = [0, 3, 3], sizes = [4, 16, 16], strides = [1, 1, 1]} : vector<4x20x20xf32> to vector<4x16x16xf32>
    %98 = vector.broadcast %96 : vector<4x1x1xf32> to vector<4x16x16xf32>
    %99 = arith.mulf %97, %98 : vector<4x16x16xf32>
    %100 = arith.addf %95, %99 : vector<4x16x16xf32>
    %101 = vector.extract_strided_slice %2 {offsets = [0, 3, 4], sizes = [4, 1, 1], strides = [1, 1, 1]} : vector<4x5x5xf32> to vector<4x1x1xf32>
    %102 = vector.extract_strided_slice %1 {offsets = [0, 3, 4], sizes = [4, 16, 16], strides = [1, 1, 1]} : vector<4x20x20xf32> to vector<4x16x16xf32>
    %103 = vector.broadcast %101 : vector<4x1x1xf32> to vector<4x16x16xf32>
    %104 = arith.mulf %102, %103 : vector<4x16x16xf32>
    %105 = arith.addf %100, %104 : vector<4x16x16xf32>
    %106 = vector.extract_strided_slice %2 {offsets = [0, 4, 0], sizes = [4, 1, 1], strides = [1, 1, 1]} : vector<4x5x5xf32> to vector<4x1x1xf32>
    %107 = vector.extract_strided_slice %1 {offsets = [0, 4, 0], sizes = [4, 16, 16], strides = [1, 1, 1]} : vector<4x20x20xf32> to vector<4x16x16xf32>
    %108 = vector.broadcast %106 : vector<4x1x1xf32> to vector<4x16x16xf32>
    %109 = arith.mulf %107, %108 : vector<4x16x16xf32>
    %110 = arith.addf %105, %109 : vector<4x16x16xf32>
    %111 = vector.extract_strided_slice %2 {offsets = [0, 4, 1], sizes = [4, 1, 1], strides = [1, 1, 1]} : vector<4x5x5xf32> to vector<4x1x1xf32>
    %112 = vector.extract_strided_slice %1 {offsets = [0, 4, 1], sizes = [4, 16, 16], strides = [1, 1, 1]} : vector<4x20x20xf32> to vector<4x16x16xf32>
    %113 = vector.broadcast %111 : vector<4x1x1xf32> to vector<4x16x16xf32>
    %114 = arith.mulf %112, %113 : vector<4x16x16xf32>
    %115 = arith.addf %110, %114 : vector<4x16x16xf32>
    %116 = vector.extract_strided_slice %2 {offsets = [0, 4, 2], sizes = [4, 1, 1], strides = [1, 1, 1]} : vector<4x5x5xf32> to vector<4x1x1xf32>
    %117 = vector.extract_strided_slice %1 {offsets = [0, 4, 2], sizes = [4, 16, 16], strides = [1, 1, 1]} : vector<4x20x20xf32> to vector<4x16x16xf32>
    %118 = vector.broadcast %116 : vector<4x1x1xf32> to vector<4x16x16xf32>
    %119 = arith.mulf %117, %118 : vector<4x16x16xf32>
    %120 = arith.addf %115, %119 : vector<4x16x16xf32>
    %121 = vector.extract_strided_slice %2 {offsets = [0, 4, 3], sizes = [4, 1, 1], strides = [1, 1, 1]} : vector<4x5x5xf32> to vector<4x1x1xf32>
    %122 = vector.extract_strided_slice %1 {offsets = [0, 4, 3], sizes = [4, 16, 16], strides = [1, 1, 1]} : vector<4x20x20xf32> to vector<4x16x16xf32>
    %123 = vector.broadcast %121 : vector<4x1x1xf32> to vector<4x16x16xf32>
    %124 = arith.mulf %122, %123 : vector<4x16x16xf32>
    %125 = arith.addf %120, %124 : vector<4x16x16xf32>
    %126 = vector.extract_strided_slice %2 {offsets = [0, 4, 4], sizes = [4, 1, 1], strides = [1, 1, 1]} : vector<4x5x5xf32> to vector<4x1x1xf32>
    %127 = vector.extract_strided_slice %1 {offsets = [0, 4, 4], sizes = [4, 16, 16], strides = [1, 1, 1]} : vector<4x20x20xf32> to vector<4x16x16xf32>
    %128 = vector.broadcast %126 : vector<4x1x1xf32> to vector<4x16x16xf32>
    %129 = arith.mulf %127, %128 : vector<4x16x16xf32>
    %130 = arith.addf %125, %129 : vector<4x16x16xf32>
    %131 = vector.broadcast %3 : vector<4x1x1xf32> to vector<4x16x16xf32>
    %132 = arith.addf %130, %131 : vector<4x16x16xf32>
    %cst_9 = arith.constant 0.000000e+00 : f32
    %133 = vector.broadcast %cst_9 : f32 to vector<4x16x16xf32>
    %134 = arith.subf %133, %132 : vector<4x16x16xf32>
    %135 = math.exp %134 : vector<4x16x16xf32>
    %cst_10 = arith.constant 1.000000e+00 : f32
    %136 = vector.broadcast %cst_10 : f32 to vector<4x16x16xf32>
    %137 = arith.addf %136, %135 : vector<4x16x16xf32>
    %cst_11 = arith.constant 1.000000e+00 : f32
    %138 = vector.broadcast %cst_11 : f32 to vector<4x16x16xf32>
    %139 = arith.divf %138, %137 : vector<4x16x16xf32>
    %140 = arith.mulf %4, %139 : vector<4x16x16xf32>
    %c0_12 = arith.constant 0 : index
    %c0_13 = arith.constant 0 : index
    %c0_14 = arith.constant 0 : index
    %c0_15 = arith.constant 0 : index
    %141 = vector.load %arg5[%c0_12, %c0_13, %c0_14, %c0_15] : memref<1x4x16x16xf32, #tpu.memory_space<vmem>>, vector<1x4x16x16xf32>
    %142 = vector.shape_cast %141 : vector<1x4x16x16xf32> to vector<4x16x16xf32>
    %143 = vector.shape_cast %140 : vector<4x16x16xf32> to vector<1x4x16x16xf32>
    tpu.vector_store %arg5[%c0_12, %c0_13, %c0_14, %c0_15], %143 {strides = array<i32>} : memref<1x4x16x16xf32, #tpu.memory_space<vmem>>, vector<1x4x16x16xf32>,
    return
  }
  func.func @transform_0(%arg0: i32, %arg1: i32) -> (i32, i32, i32, i32) {
    %c0_i32 = arith.constant 0 : i32
    %c0_i32_0 = arith.constant 0 : i32
    %c0_i32_1 = arith.constant 0 : i32
    return %arg0, %arg1, %c0_i32, %c0_i32_0 : i32, i32, i32, i32
  }
  func.func @transform_1(%arg0: i32, %arg1: i32) -> (i32, i32, i32) {
    %c0_i32 = arith.constant 0 : i32
    %c0_i32_0 = arith.constant 0 : i32
    %c0_i32_1 = arith.constant 0 : i32
    return %arg1, %c0_i32, %c0_i32_0 : i32, i32, i32
  }
  func.func @transform_2(%arg0: i32, %arg1: i32) -> (i32, i32, i32) {
    %c0_i32 = arith.constant 0 : i32
    %c0_i32_0 = arith.constant 0 : i32
    %c0_i32_1 = arith.constant 0 : i32
    return %arg1, %c0_i32, %c0_i32_0 : i32, i32, i32
  }
  func.func @transform_3(%arg0: i32, %arg1: i32) -> (i32, i32, i32, i32) {
    %c0_i32 = arith.constant 0 : i32
    %c0_i32_0 = arith.constant 0 : i32
    %c0_i32_1 = arith.constant 0 : i32
    return %arg0, %arg1, %c0_i32, %c0_i32_0 : i32, i32, i32, i32
  }
}

</mosaic_0001>

<bundles_post_ra>
// kernel: tpu_custom_call.1
= control target key start
LH: loop header
LB: loop body
LE: loop exit
PB: predicated region body
PF: predicated region fallthrough
CT: control target
= control target key end

     0   :  { %8 = vsyncpa [#allocation3], 0  ;;  %s4892_s0 = inlined_call_operand.vmem [shape: f32[2,4,20,20], index: 0, kind: input, shape index: {}]   ;;  %s4893_s1 = inlined_call_operand.vmem [shape: f32[4,5,5], index: 1, kind: input, shape index: {}]   ;;  %s4894_s2 = inlined_call_operand.vmem [shape: f32[4,1,1], index: 2, kind: input, shape index: {}]   ;;  %s4895_s3 = inlined_call_operand.hbm [shape: f32[2,4,16,16], index: 3, kind: output, shape index: {}]  }
   0x1   :  { %10 = vsyncpa [#allocation3 + $0x1], 0  ;;  %s3218_s12 = smov 0   ;;  %s3220_s13 = smov 0  }
   0x2   :  { %s3222_s14 = smov 0   ;;  %s3224_s15 = smov 0  }
   0x3   :  { %s3226_s16 = smov 0   ;;  %s3228_s17 = smov 0  }
   0x4 LB: > { %s2762_s18 = sadd.s32 4294967295, %s3187_s17   ;;  %s2763_s19 = sadd.s32 4294967294, %s3187_s17   ;;  %s3187_s17 = sphi %s3228_s17, %s16_s17   ;;  %s3183_s16 = sphi %s3226_s16, %s4986_s16   ;;  %s3179_s15 = sphi %s3224_s15, %s4985_s15   ;;  %s3175_s14 = sphi %s3222_s14, %s4984_s14   ;;  %s3171_s13 = sphi %s3220_s13, %s4983_s13   ;;  %s3167_s12 = sphi %s3218_s12, %s4982_s12  }
   0x5   : > { %s28_s20 = sadd.s32 1, %s3183_s16  ;;  %s117_s21 = sadd.s32 1, %s3175_s14 }
   0x6   : > { %p30_p0 = scmp.ge.s32.totalorder %s28_s20, 2  ;;  %p127_p1 = scmp.ne.s32.totalorder %s3175_s14, %s3171_s13 }
   0x7   : > { %p128_p2 = scmp.eq.s32.totalorder %s2762_s18, 1  ;;  %p133_p3 = scmp.ne.s32.totalorder %s3171_s13, %s3167_s12 }
   0x8   : > { %s4988_s20 = smov (%p30_p0, %s28_s20), 0  ;;  %p134_p5 = scmp.eq.s32.totalorder %s2763_s19, 1 }
   0x9   : > { %p3258_p4 = por %p128_p2, %p127_p1  ;;  %s112_s23 = ssub.s32 %s3183_s16, %s4988_s20 }
   0xa   : > { %p2768_p6 = scmp.ge.s32.totalorder %s3187_s17, 1  ;;  %p115_p7 = scmp.eq.s32.totalorder %s112_s23, 0 }
   0xb   : > { %p3265_p8 = por %p134_p5, %p133_p3  ;;  %p183_p9 = scmp.lt.s32.totalorder %s3187_s17, 3 }
   0xc   : > { %s3271_s25 = scalar_select %p115_p7, %s3175_s14, %s117_s21  }
   0xd   : > { %p184_p10 = pnand %p2768_p6, %p183_p9 }
   0xf   : > { %187 = sbr.rel (%p184_p10) target bundleno = 1096 (0x448), region = 32 }
  0x14   : > { %v3276_v0 = vld [vmem:[%s4893_s1] sm:$0x1f]  ;;  %s3189_s28 = smov 127   ;;  %v3283_v1 = vld [vmem:[%s4893_s1 + $0x8] sm:$0x1f]  ;;  %s4896_s8 = smov 126  }
  0x15   : > { %296 = vrot.lane.b32.xlu0 %v3276_v0, %s3189_s28  ;;  %v3288_v2 = vld [vmem:[%s4893_s1 + $0x10] sm:$0x1f]  ;;  %2782 = vpush %v3276_v0  ;;  %v3297_v3 = vld [vmem:[%s4893_s1 + $0x18] sm:$0x1f]  ;;  %s4898_s9 = smov 125   ;;  %s4900_s10 = smov 124  }
  0x16   : > { %300 = vrot.lane.b32.xlu1 %v3288_v2, %s3189_s28  ;;  %2784 = vpush %v3283_v1  ;;  %v568_v4 = vrot.slane %v3276_v0, 1  ;;  %v569_v5 = vrot.slane %v3283_v1, 1  ;;  %v570_v6 = vrot.slane %v3288_v2, 1  ;;  %v571_v7 = vrot.slane %v3297_v3, 1  ;;  %p222_p11 = scmp.lt.s32.totalorder %s3179_s15, 1 }
  0x17   : > { %2786 = vpush %v3288_v2  ;;  %v3399_v58 = vrot.slane %v3276_v0, 2  ;;  %v3406_v61 = vrot.slane %v3283_v1, 2  ;;  %v3409_v63 = vrot.slane %v3288_v2, 2  ;;  %vm608_vm0 = vcmask 1046528  }
  0x18   : > { %2788 = vpush %v3297_v3  ;;  %s223_s11 = scalar_select %p222_p11, %s3179_s15, 1  ;;  %vm1069_vm1 = vcmask 1045504   ;;  %vm1530_vm2 = vcmask 1044480   ;;  %vm1991_vm3 = vcmask 1043456   ;;  %vm2512_vm4 = vcmask 1041408  }
  0x19   : > { %298 = vrot.lane.b32.xlu0 %v3283_v1, %s3189_s28  ;;  %vm2621_vm5 = vcmask 130050   ;;  %vm2623_vm6 = vcmask 130048   ;;  %vm2625_vm7 = vcmask 123904  }
  0x1a   : > { %302 = vrot.lane.b32.xlu1 %v3297_v3, %s3189_s28  ;;  %s2781_s18 = smul.u32 96, %s223_s11 }
  0x1c   : > { %s3358_s27 = scalar_lea.vmem %s4892_s0, %s2781_s18 }
  0x1d   : > { %364 = vrot.lane.b32.xlu0 %v3276_v0, %s4896_s8  ;;  %v3365_v33 = vld [vmem:[%s3358_s27] sm:$0xff]  ;;  %v3368_v34 = vld [vmem:[%s3358_s27 + $0x8] sm:$0xff]  ;;  %v3375_v41 = vld [vmem:[%s3358_s27 + $0x18] sm:$0xff] }
  0x1e   : > { %366 = vrot.lane.b32.xlu1 %v3283_v1, %s4896_s8  ;;  %v3378_v42 = vld [vmem:[%s3358_s27 + $0x20] sm:$0xff]  ;;  %v3383_v48 = vld [vmem:[%s3358_s27 + $0x30] sm:$0xff]  ;;  %v3386_v49 = vld [vmem:[%s3358_s27 + $0x38] sm:$0xff] }
  0x1f   : > { %v3393_v55 = vld [vmem:[%s3358_s27 + $0x48] sm:$0xff]  ;;  %v3396_v56 = vld [vmem:[%s3358_s27 + $0x50] sm:$0xff] }
  0x21   : > { %368 = vrot.lane.b32.xlu0 %v3288_v2, %s4896_s8 }
  0x22   : > { %370 = vrot.lane.b32.xlu1 %v3297_v3, %s4896_s8 }
  0x25   : > { %432 = vrot.lane.b32.xlu0 %v3276_v0, %s4898_s9 }
  0x26   : > { %434 = vrot.lane.b32.xlu1 %v3283_v1, %s4898_s9 }
  0x29   : > { %436 = vrot.lane.b32.xlu0 %v3288_v2, %s4898_s9 }
  0x2a   : > { %438 = vrot.lane.b32.xlu1 %v3297_v3, %s4898_s9 }
  0x2d   : > { %500 = vrot.lane.b32.xlu0 %v3276_v0, %s4900_s10 }
  0x2e   : > { %502 = vrot.lane.b32.xlu1 %v3283_v1, %s4900_s10 }
  0x31   : > { %504 = vrot.lane.b32.xlu0 %v3288_v2, %s4900_s10 }
  0x32   : > { %506 = vrot.lane.b32.xlu1 %v3297_v3, %s4900_s10 }
  0x35   : > { %645 = vrot.lane.b32.xlu0 %v568_v4, %s3189_s28 }
  0x36   : > { %647 = vrot.lane.b32.xlu1 %v569_v5, %s3189_s28 }
  0x39   : > { %649 = vrot.lane.b32.xlu0 %v570_v6, %s3189_s28 }
  0x3a   : > { %651 = vrot.lane.b32.xlu1 %v571_v7, %s3189_s28 }
  0x3d   : > { %741 = vrot.lane.b32.xlu0 %v568_v4, %s4896_s8 }
  0x3e   : > { %743 = vrot.lane.b32.xlu1 %v569_v5, %s4896_s8 }
  0x41   : > { %745 = vrot.lane.b32.xlu0 %v570_v6, %s4896_s8 }
  0x42   : > { %747 = vrot.lane.b32.xlu1 %v571_v7, %s4896_s8 }
  0x45   : > { %837 = vrot.lane.b32.xlu0 %v568_v4, %s4898_s9 }
  0x46   : > { %839 = vrot.lane.b32.xlu1 %v569_v5, %s4898_s9  ;;  %s3351_s19 = spop %2782 }
  0x47   : > { %s3353_s21 = spop %2784 }
  0x48   : > { %s3360_s29 = spop %2786 }
  0x49   : > { %841 = vrot.lane.b32.xlu0 %v570_v6, %s4898_s9  ;;  %s3362_s30 = spop %2788 }
  0x4a   : > { %843 = vrot.lane.b32.xlu1 %v571_v7, %s4898_s9 }
  0x4d   : > { %933 = vrot.lane.b32.xlu0 %v568_v4, %s4900_s10 }
  0x4e   : > { %935 = vrot.lane.b32.xlu1 %v569_v5, %s4900_s10 }
  0x51   : > { %937 = vrot.lane.b32.xlu0 %v570_v6, %s4900_s10 }
  0x52   : > { %939 = vrot.lane.b32.xlu1 %v571_v7, %s4900_s10 }
  0x87   : > { %v297_v8 = vpop.permute.xlu0 %296 }
  0x88   : > { %2790 = vpush %v297_v8  ;;  %v301_v9 = vpop.permute.xlu1 %300 }
  0x8b   : > { %v299_v10 = vpop.permute.xlu0 %298 }
  0x8c   : > { %2792 = vpush %v299_v10  ;;  %v303_v11 = vpop.permute.xlu1 %302 }
  0x8d   : > { %2794 = vpush %v301_v9 }
  0x8e   : > { %2796 = vpush %v303_v11 }
  0x8f   : > { %v365_v12 = vpop.permute.xlu0 %364 }
  0x90   : > { %2798 = vpush %v365_v12  ;;  %v367_v13 = vpop.permute.xlu1 %366 }
  0x91   : > { %2800 = vpush %v367_v13 }
  0x93   : > { %v369_v14 = vpop.permute.xlu0 %368 }
  0x94   : > { %2802 = vpush %v369_v14  ;;  %v371_v15 = vpop.permute.xlu1 %370 }
  0x95   : > { %2804 = vpush %v371_v15 }
  0x97   : > { %v433_v16 = vpop.permute.xlu0 %432 }
  0x98   : > { %2806 = vpush %v433_v16  ;;  %v435_v17 = vpop.permute.xlu1 %434 }
  0x99   : > { %2808 = vpush %v435_v17 }
  0x9b   : > { %v437_v18 = vpop.permute.xlu0 %436 }
  0x9c   : > { %2810 = vpush %v437_v18  ;;  %v439_v19 = vpop.permute.xlu1 %438 }
  0x9d   : > { %2812 = vpush %v439_v19 }
  0x9f   : > { %v501_v20 = vpop.permute.xlu0 %500 }
  0xa0   : > { %2814 = vpush %v501_v20  ;;  %v503_v21 = vpop.permute.xlu1 %502 }
  0xa1   : > { %2816 = vpush %v503_v21 }
  0xa3   : > { %v505_v22 = vpop.permute.xlu0 %504 }
  0xa4   : > { %2818 = vpush %v505_v22  ;;  %v507_v23 = vpop.permute.xlu1 %506 }
  0xa5   : > { %2820 = vpush %v507_v23 }
  0xa6   : > { %2822 = vpush %v568_v4  ;;  %v3413_v4 = vrot.slane %v3297_v3, 2 }
  0xa7   : > { %v646_v24 = vpop.permute.xlu0 %645  ;;  %2824 = vpush %v569_v5 }
  0xa8   : > { %2826 = vpush %v570_v6  ;;  %v648_v25 = vpop.permute.xlu1 %647 }
  0xa9   : > { %2828 = vpush %v571_v7 }
  0xaa   : > { %2830 = vpush %v646_v24 }
  0xab   : > { %2832 = vpush %v648_v25  ;;  %v650_v26 = vpop.permute.xlu0 %649 }
  0xac   : > { %2834 = vpush %v650_v26  ;;  %v652_v27 = vpop.permute.xlu1 %651 }
  0xad   : > { %2836 = vpush %v652_v27 }
  0xaf   : > { %v742_v28 = vpop.permute.xlu0 %741 }
  0xb0   : > { %2838 = vpush %v742_v28  ;;  %v744_v29 = vpop.permute.xlu1 %743 }
  0xb1   : > { %2840 = vpush %v744_v29 }
  0xb3   : > { %v746_v30 = vpop.permute.xlu0 %745 }
  0xb4   : > { %2842 = vpush %v746_v30  ;;  %v748_v31 = vpop.permute.xlu1 %747 }
  0xb5   : > { %2844 = vpush %v748_v31 }
  0xb7   : > { %v838_v32 = vpop.permute.xlu0 %837 }
  0xb8   : > { %2846 = vpush %v838_v32  ;;  %v840_v35 = vpop.permute.xlu1 %839 }
  0xb9   : > { %s2791_s4 = spop %2790  ;;  %2848 = vpush %v840_v35 }
  0xba   : > { %v305_v36 = vstv %s2791_s4 }
  0xbb   : > { %v316_v37 = vmul.f32 %v305_v36, %v3365_v33  ;;  %v317_v38 = vmul.f32 %v305_v36, %v3368_v34  ;;  %v842_v39 = vpop.permute.xlu0 %841 }
  0xbc   : > { %2850 = vpush %v842_v39  ;;  %v844_v40 = vpop.permute.xlu1 %843 }
  0xbd   : > { %s2793_s5 = spop %2792  ;;  %334 = vrot.lane.b32.xlu1 %v317_v38, %s3189_s28  ;;  %332 = vrot.lane.b32.xlu0 %v316_v37, %s3189_s28  ;;  %2852 = vpush %v844_v40  ;;  %v3466_v37 = vld [vmem:[%s3358_s27 + $0x10] sm:$0xf] }
  0xbe   : > { %v308_v43 = vstv %s2793_s5  ;;  %s2795_s6 = spop %2794 }
  0xbf   : > { %v318_v44 = vmul.f32 %v308_v43, %v3375_v41  ;;  %v319_v45 = vmul.f32 %v308_v43, %v3378_v42  ;;  %v311_v46 = vstv %s2795_s6  ;;  %s2797_s7 = spop %2796  ;;  %v934_v47 = vpop.permute.xlu0 %933 }
  0xc0   : > { %2854 = vpush %v934_v47  ;;  %v936_v50 = vpop.permute.xlu1 %935  ;;  %v320_v51 = vmul.f32 %v311_v46, %v3383_v48  ;;  %v321_v52 = vmul.f32 %v311_v46, %v3386_v49  ;;  %v314_v53 = vstv %s2797_s7  ;;  %v3482_v47 = vld [vmem:[%s3358_s27 + $0x28] sm:$0xf] }
  0xc1   : > { %338 = vrot.lane.b32.xlu1 %v319_v45, %s3189_s28  ;;  %336 = vrot.lane.b32.xlu0 %v318_v44, %s3189_s28  ;;  %2856 = vpush %v936_v50  ;;  %s2799_s11 = spop %2798  ;;  %v322_v59 = vmul.f32 %v314_v53, %v3393_v55  ;;  %v323_v60 = vmul.f32 %v314_v53, %v3396_v56 }
  0xc2   : > { %v373_v62 = vstv %s2799_s11  ;;  %s2801_s18 = spop %2800 }
  0xc3   : > { %v938_v54 = vpop.permute.xlu0 %937  ;;  %v384_v5 = vmul.f32 %v373_v62, %v3365_v33  ;;  %v385_v6 = vmul.f32 %v373_v62, %v3368_v34  ;;  %v376_v7 = vstv %s2801_s18 }
  0xc4   : > { %2858 = vpush %v938_v54  ;;  %v940_v57 = vpop.permute.xlu1 %939  ;;  %v386_v8 = vmul.f32 %v376_v7, %v3375_v41  ;;  %v387_v9 = vmul.f32 %v376_v7, %v3378_v42 }
  0xc5   : > { %342 = vrot.lane.b32.xlu1 %v321_v52, %s3189_s28  ;;  %340 = vrot.lane.b32.xlu0 %v320_v51, %s3189_s28  ;;  %2860 = vpush %v940_v57  ;;  %s2803_s23 = spop %2802 }
  0xc6   : > { %2862 = vpush %v3399_v58  ;;  %v379_v10 = vstv %s2803_s23  ;;  %s2805_s26 = spop %2804 }
  0xc7   : > { %2864 = vpush %v3406_v61  ;;  %v388_v11 = vmul.f32 %v379_v10, %v3383_v48  ;;  %v389_v12 = vmul.f32 %v379_v10, %v3386_v49  ;;  %v382_v13 = vstv %s2805_s26 }
  0xc8   : > { %2866 = vpush %v3409_v63  ;;  %v390_v14 = vmul.f32 %v382_v13, %v3393_v55  ;;  %v391_v15 = vmul.f32 %v382_v13, %v3396_v56 }
  0xc9   : > { %346 = vrot.lane.b32.xlu1 %v323_v60, %s3189_s28  ;;  %344 = vrot.lane.b32.xlu0 %v322_v59, %s3189_s28  ;;  %2868 = vpush %v3413_v4  ;;  %s2807_s4 = spop %2806 }
  0xca   : > { %v441_v16 = vstv %s2807_s4  ;;  %s2809_s5 = spop %2808 }
  0xcb   : > { %v452_v17 = vmul.f32 %v441_v16, %v3365_v33  ;;  %v453_v18 = vmul.f32 %v441_v16, %v3368_v34  ;;  %v444_v19 = vstv %s2809_s5 }
  0xcc   : > { %v454_v20 = vmul.f32 %v444_v19, %v3375_v41  ;;  %v455_v21 = vmul.f32 %v444_v19, %v3378_v42 }
  0xcd   : > { %402 = vrot.lane.b32.xlu1 %v385_v6, %s4896_s8  ;;  %400 = vrot.lane.b32.xlu0 %v384_v5, %s4896_s8  ;;  %s2811_s6 = spop %2810 }
  0xce   : > { %s2813_s7 = spop %2812  ;;  %v447_v22 = vstv %s2811_s6 }
  0xcf   : > { %v456_v23 = vmul.f32 %v447_v22, %v3383_v48  ;;  %v457_v24 = vmul.f32 %v447_v22, %v3386_v49  ;;  %v450_v25 = vstv %s2813_s7 }
  0xd0   : > { %v458_v26 = vmul.f32 %v450_v25, %v3393_v55  ;;  %v459_v27 = vmul.f32 %v450_v25, %v3396_v56 }
  0xd1   : > { %406 = vrot.lane.b32.xlu1 %v387_v9, %s4896_s8  ;;  %404 = vrot.lane.b32.xlu0 %v386_v8, %s4896_s8  ;;  %s2815_s11 = spop %2814 }
  0xd2   : > { %s2817_s18 = spop %2816  ;;  %v509_v28 = vstv %s2815_s11 }
  0xd3   : > { %v520_v29 = vmul.f32 %v509_v28, %v3365_v33  ;;  %v521_v30 = vmul.f32 %v509_v28, %v3368_v34  ;;  %v512_v31 = vstv %s2817_s18 }
  0xd4   : > { %v522_v35 = vmul.f32 %v512_v31, %v3375_v41  ;;  %v523_v36 = vmul.f32 %v512_v31, %v3378_v42 }
  0xd5   : > { %410 = vrot.lane.b32.xlu1 %v389_v12, %s4896_s8  ;;  %408 = vrot.lane.b32.xlu0 %v388_v11, %s4896_s8  ;;  %s3442_s23 = spop %2818  ;;  %v3520_v12 = vld [vmem:[%s3358_s27 + $0x40] sm:$0xf] }
  0xd6   : > { %s3448_s26 = spop %2820  ;;  %v515_v32 = vstv %s3442_s23 }
  0xd7   : > { %s2823_s4 = spop %2822  ;;  %v524_v40 = vmul.f32 %v515_v32, %v3383_v48  ;;  %v518_v43 = vstv %s3448_s26  ;;  %v525_v51 = vmul.f32 %v515_v32, %v3386_v49 }
  0xd8   : > { %s2825_s5 = spop %2824  ;;  %v573_v38 = vstv %s2823_s4  ;;  %v526_v57 = vmul.f32 %v518_v43, %v3393_v55  ;;  %v527_v62 = vmul.f32 %v518_v43, %v3396_v56 }
  0xd9   : > { %414 = vrot.lane.b32.xlu1 %v391_v15, %s4896_s8  ;;  %412 = vrot.lane.b32.xlu0 %v390_v14, %s4896_s8  ;;  %s2827_s6 = spop %2826  ;;  %v3473_v44 = vmul.f32 %v573_v38, %v3365_v33  ;;  %v3476_v45 = vmul.f32 %v573_v38, %v3368_v34  ;;  %v3479_v46 = vmul.f32 %v573_v38, %v3466_v37  ;;  %v576_v50 = vstv %s2825_s5 }
  0xda   : > { %s3458_s7 = spop %2828  ;;  %v579_v52 = vstv %s2827_s6  ;;  %v3499_v5 = vmul.f32 %v576_v50, %v3375_v41  ;;  %v3502_v6 = vmul.f32 %v576_v50, %v3378_v42  ;;  %v3505_v7 = vmul.f32 %v576_v50, %v3482_v47 }
  0xdb   : > { %s2831_s8 = spop %2830  ;;  %v609_v8 = vrot.slane %v3473_v44, 1  ;;  %v610_v9 = vrot.slane %v3476_v45, 1  ;;  %v612_v10 = vrot.slane %v3479_v46, 1  ;;  %v3513_v11 = vmul.f32 %v579_v52, %v3383_v48 }
  0xdc   : > { %v654_v39 = vstv %s2831_s8  ;;  %s2833_s11 = spop %2832  ;;  %v615_v22 = vrot.slane %v3502_v6, 1  ;;  %v3538_v25 = vmul.f32 %v579_v52, %v3386_v49 }
  0xdd   : > { %470 = vrot.lane.b32.xlu1 %v453_v18, %s4898_s9  ;;  %468 = vrot.lane.b32.xlu0 %v452_v17, %s4898_s9  ;;  %s3470_s18 = spop %2834  ;;  %v666_v53 = vmul.f32 %v654_v39, %v3368_v34  ;;  %v667_v54 = vmul.f32 %v654_v39, %v3466_v37  ;;  %v665_v59 = vmul.f32 %v654_v39, %v3365_v33  ;;  %v657_v60 = vstv %s2833_s11 }
  0xde   : > { %s3484_s23 = spop %2836  ;;  %v668_v15 = vmul.f32 %v657_v60, %v3375_v41  ;;  %v660_v16 = vstv %s3470_s18  ;;  %v582_v17 = vstv %s3458_s7  ;;  %v669_v19 = vmul.f32 %v657_v60, %v3378_v42 }
  0xdf   : > { %v690_v13 = vrot.slane %v666_v53, 1  ;;  %v692_v14 = vrot.slane %v667_v54, 1  ;;  %v689_v18 = vrot.slane %v665_v59, 1  ;;  %v673_v28 = vmul.f32 %v660_v16, %v3520_v12 }
  0xe0   : > { %v694_v31 = vrot.slane %v668_v15, 1  ;;  %v619_v43 = vrot.slane %v3513_v11, 1  ;;  %v594_v50 = vmul.f32 %v582_v17, %v3396_v56 }
  0xe1   : > { %474 = vrot.lane.b32.xlu1 %v455_v21, %s4898_s9  ;;  %472 = vrot.lane.b32.xlu0 %v454_v20, %s4898_s9  ;;  %s3491_s8 = spop %2838  ;;  %v670_v20 = vmul.f32 %v657_v60, %v3482_v47  ;;  %v614_v21 = vrot.slane %v3499_v5, 1  ;;  %v693_v32 = vsel %vm608_vm0, %v690_v13, %v692_v14  ;;  %v691_v39 = vsel %vm608_vm0, %v689_v18, %v690_v13 }
  0xe2   : > { %s3495_s26 = spop %2840  ;;  %v750_v59 = vstv %s3491_s8  ;;  %v620_v60 = vrot.slane %v3538_v25, 1  ;;  %s4912_s8 = smov 124  }
  0xe3   : > { %v697_v38 = vrot.slane %v670_v20, 1  ;;  %v3617_v44 = vsel %vm608_vm0, %v614_v21, %v615_v22 }
  0xe5   : > { %478 = vrot.lane.b32.xlu1 %v457_v24, %s4898_s9  ;;  %476 = vrot.lane.b32.xlu0 %v456_v23, %s4898_s9  ;;  %s3507_s4 = spop %2842  ;;  %v617_v23 = vrot.slane %v3505_v7, 1  ;;  %v663_v24 = vstv %s3484_s23 }
  0xe6   : > { %s3515_s5 = spop %2844 }
  0xe7   : > { %v3609_v46 = vsel %vm608_vm0, %v615_v22, %v617_v23 }
  0xe9   : > { %482 = vrot.lane.b32.xlu1 %v459_v27, %s4898_s9  ;;  %480 = vrot.lane.b32.xlu0 %v458_v26, %s4898_s9  ;;  %s3524_s6 = spop %2846  ;;  %v592_v26 = vmul.f32 %v579_v52, %v3520_v12  ;;  %v672_v27 = vmul.f32 %v660_v16, %v3386_v49 }
  0xea   : > { %s3529_s11 = spop %2848 }
  0xeb   : > { %v700_v54 = vrot.slane %v672_v27, 1 }
  0xed   : > { %538 = vrot.lane.b32.xlu1 %v521_v30, %s4900_s10  ;;  %536 = vrot.lane.b32.xlu0 %v520_v29, %s4900_s10  ;;  %s3535_s9 = spop %2850  ;;  %v3546_v29 = vld [vmem:[%s3358_s27 + $0x58] sm:$0xf]  ;;  %v3549_v30 = vmul.f32 %v582_v17, %v3393_v55 }
  0xee   : > { %s3543_s7 = spop %2852  ;;  %v676_v52 = vmul.f32 %v663_v24, %v3546_v29  ;;  %v595_v53 = vmul.f32 %v582_v17, %v3546_v29 }
  0xef   : > { %v624_v7 = vrot.slane %v3549_v30, 1  ;;  %v762_v30 = vmul.f32 %v750_v59, %v3368_v34 }
  0xf0   : > { %v707_v18 = vrot.slane %v676_v52, 1  ;;  %v627_v25 = vrot.slane %v595_v53, 1  ;;  %v756_v52 = vstv %s3507_s4  ;;  %v759_v53 = vstv %s3515_s5 }
  0xf1   : > { %542 = vrot.lane.b32.xlu1 %v523_v36, %s4900_s10  ;;  %540 = vrot.lane.b32.xlu0 %v522_v35, %s4900_s10  ;;  %v671_v35 = vmul.f32 %v660_v16, %v3383_v48  ;;  %s3555_s18 = spop %2854  ;;  %v695_v36 = vrot.slane %v669_v19, 1  ;;  %v761_v19 = vmul.f32 %v750_v59, %v3365_v33 }
  0xf2   : > { %s3559_s23 = spop %2856 }
  0xf3   : > { %v699_v11 = vrot.slane %v671_v35, 1  ;;  %v698_v13 = vsel %vm608_vm0, %v695_v36, %v697_v38  ;;  %v696_v14 = vsel %vm608_vm0, %v694_v31, %v695_v36  ;;  %v763_v31 = vmul.f32 %v750_v59, %v3466_v37 }
  0xf4   : > { %v3595_v38 = vsel %vm608_vm0, %v610_v9, %v612_v10  ;;  %v768_v59 = vmul.f32 %v756_v52, %v3386_v49 }
  0xf5   : > { %546 = vrot.lane.b32.xlu1 %v525_v51, %s4900_s10  ;;  %544 = vrot.lane.b32.xlu0 %v524_v40, %s4900_s10  ;;  %v674_v40 = vmul.f32 %v663_v24, %v3393_v55  ;;  %v675_v51 = vmul.f32 %v663_v24, %v3396_v56  ;;  %v625_v24 = vrot.slane %v594_v50, 1  ;;  %v788_v21 = vrot.slane %v763_v31, 1 }
  0xf7   : > { %v704_v15 = vrot.slane %v674_v40, 1  ;;  %v705_v17 = vrot.slane %v675_v51, 1  ;;  %v785_v40 = vrot.slane %v761_v19, 1  ;;  %v3629_v6 = vsel %vm608_vm0, %v625_v24, %v627_v25 }
  0xf8   : > { %v3632_v5 = vsel %vm608_vm0, %v624_v7, %v625_v24  ;;  %v772_v19 = vmul.f32 %v759_v53, %v3546_v29 }
  0xf9   : > { %550 = vrot.lane.b32.xlu1 %v527_v62, %s4900_s10  ;;  %548 = vrot.lane.b32.xlu0 %v526_v57, %s4900_s10  ;;  %s2859_s10 = spop %2858  ;;  %v702_v57 = vrot.slane %v673_v28, 1  ;;  %v622_v62 = vrot.slane %v592_v26, 1  ;;  %v701_v28 = vsel %vm608_vm0, %v699_v11, %v700_v54  ;;  %v708_v50 = vsel %vm608_vm0, %v705_v17, %v707_v18  ;;  %4909 = vst [vmem:[#allocation5_spill] sm:$0xff] %v3632_v5 }
  0xfa   : > { %v3573_v16 = vstv %s2859_s10  ;;  %v706_v51 = vsel %vm608_vm0, %v704_v15, %v705_v17  ;;  %v771_v15 = vmul.f32 %v759_v53, %v3396_v56  ;;  %s4910_s10 = smov 126   ;;  %v796_v17 = vrot.slane %v768_v59, 1 }
  0xfb   : > { %v3578_v20 = vmul.f32 %v3573_v16, %v3386_v49  ;;  %v703_v26 = vsel %vm608_vm0, %v700_v54, %v702_v57  ;;  %v961_v27 = vmul.f32 %v3573_v16, %v3520_v12  ;;  %v3620_v45 = vsel %vm608_vm0, %v620_v60, %v622_v62 }
  0xfc   : > { %v803_v31 = vrot.slane %v772_v19, 1 }
  0xfd   : > { %711 = vrot.lane.b32.xlu1 %v693_v32, %s3189_s28  ;;  %709 = vrot.lane.b32.xlu0 %v691_v39, %s3189_s28  ;;  %v753_v32 = vstv %s3495_s26  ;;  %v988_v35 = vrot.slane %v3578_v20, 1  ;;  %v990_v36 = vrot.slane %v961_v27, 1  ;;  %v3602_v39 = vsel %vm608_vm0, %v609_v8, %v610_v9 }
  0xfe   : > { %v764_v10 = vmul.f32 %v753_v32, %v3375_v41  ;;  %v3623_v8 = vsel %vm608_vm0, %v619_v43, %v620_v60  ;;  %v786_v9 = vrot.slane %v762_v30, 1  ;;  %v765_v23 = vmul.f32 %v753_v32, %v3378_v42 }
  0xff   : > { %v766_v22 = vmul.f32 %v753_v32, %v3482_v47  ;;  %v3639_v43 = vsel %vm608_vm0, %v988_v35, %v990_v36  ;;  %v769_v60 = vmul.f32 %v756_v52, %v3520_v12  ;;  %v846_v27 = vstv %s3524_s6 }
 0x100   : > { %v790_v54 = vrot.slane %v764_v10, 1  ;;  %v791_v57 = vrot.slane %v765_v23, 1  ;;  %v789_v7 = vsel %vm608_vm0, %v786_v9, %v788_v21  ;;  %v787_v11 = vsel %vm608_vm0, %v785_v40, %v786_v9 }
 0x101   : > { %715 = vrot.lane.b32.xlu1 %v698_v13, %s3189_s28  ;;  %713 = vrot.lane.b32.xlu0 %v696_v14, %s3189_s28  ;;  %v793_v62 = vrot.slane %v766_v22, 1  ;;  %v767_v13 = vmul.f32 %v756_v52, %v3383_v48  ;;  %v770_v14 = vmul.f32 %v759_v53, %v3393_v55  ;;  %v798_v18 = vrot.slane %v769_v60, 1 }
 0x102   : > { %v801_v30 = vrot.slane %v771_v15, 1  ;;  %v849_v36 = vstv %s3529_s11  ;;  %v859_v10 = vmul.f32 %v846_v27, %v3466_v37  ;;  %v852_v52 = vstv %s3535_s9  ;;  %s4911_s9 = smov 125  }
 0x103   : > { %v795_v24 = vrot.slane %v767_v13, 1  ;;  %v794_v25 = vsel %vm608_vm0, %v791_v57, %v793_v62  ;;  %v799_v32 = vsel %vm608_vm0, %v796_v17, %v798_v18  ;;  %v860_v23 = vmul.f32 %v849_v36, %v3375_v41 }
 0x104   : > { %v861_v21 = vmul.f32 %v849_v36, %v3378_v42  ;;  %v862_v22 = vmul.f32 %v849_v36, %v3482_v47  ;;  %v804_v59 = vsel %vm608_vm0, %v801_v30, %v803_v31  ;;  %v863_v60 = vmul.f32 %v852_v52, %v3383_v48 }
 0x105   : > { %719 = vrot.lane.b32.xlu1 %v703_v26, %s3189_s28  ;;  %717 = vrot.lane.b32.xlu0 %v701_v28, %s3189_s28  ;;  %v792_v26 = vsel %vm608_vm0, %v790_v54, %v791_v57  ;;  %v800_v28 = vrot.slane %v770_v14, 1  ;;  %v797_v40 = vsel %vm608_vm0, %v795_v24, %v796_v17  ;;  %v884_v57 = vrot.slane %v859_v10, 1 }
 0x106   : > { %v864_v62 = vmul.f32 %v852_v52, %v3386_v49  ;;  %v889_v13 = vrot.slane %v862_v22, 1  ;;  %v865_v17 = vmul.f32 %v852_v52, %v3520_v12  ;;  %v855_v18 = vstv %s3543_s7  ;;  %s2861_s7 = spop %2860 }
 0x107   : > { %v802_v9 = vsel %vm608_vm0, %v800_v28, %v801_v30  ;;  %v891_v19 = vrot.slane %v863_v60, 1  ;;  %v945_v10 = vstv %s3559_s23 }
 0x108   : > { %v892_v24 = vrot.slane %v864_v62, 1  ;;  %v894_v28 = vrot.slane %v865_v17, 1  ;;  %v956_v52 = vmul.f32 %v945_v10, %v3375_v41 }
 0x109   : > { %723 = vrot.lane.b32.xlu1 %v708_v50, %s3189_s28  ;;  %721 = vrot.lane.b32.xlu0 %v706_v51, %s3189_s28  ;;  %v857_v50 = vmul.f32 %v846_v27, %v3365_v33  ;;  %v858_v51 = vmul.f32 %v846_v27, %v3368_v34  ;;  %v868_v27 = vmul.f32 %v855_v18, %v3546_v29 }
 0x10a   : > { %v893_v36 = vsel %vm608_vm0, %v891_v19, %v892_v24 }
 0x10b   : > { %v881_v53 = vrot.slane %v857_v50, 1  ;;  %v882_v54 = vrot.slane %v858_v51, 1  ;;  %v899_v51 = vrot.slane %v868_v27, 1 }
 0x10d   : > { %807 = vrot.lane.b32.xlu1 %v789_v7, %s4910_s10  ;;  %805 = vrot.lane.b32.xlu0 %v787_v11, %s4910_s10  ;;  %v886_v7 = vrot.slane %v860_v23, 1  ;;  %v887_v11 = vrot.slane %v861_v21, 1  ;;  %v885_v14 = vsel %vm608_vm0, %v882_v54, %v884_v57  ;;  %v883_v15 = vsel %vm608_vm0, %v881_v53, %v882_v54 }
 0x10e   : > { %v957_v57 = vmul.f32 %v945_v10, %v3378_v42 }
 0x10f   : > { %v890_v30 = vsel %vm608_vm0, %v887_v11, %v889_v13  ;;  %v888_v31 = vsel %vm608_vm0, %v886_v7, %v887_v11  ;;  %v958_v7 = vmul.f32 %v945_v10, %v3482_v47  ;;  %v982_v11 = vrot.slane %v956_v52, 1 }
 0x110   : > { %v983_v13 = vrot.slane %v957_v57, 1 }
 0x111   : > { %811 = vrot.lane.b32.xlu1 %v794_v25, %s4910_s10  ;;  %809 = vrot.lane.b32.xlu0 %v792_v26, %s4910_s10  ;;  %v866_v25 = vmul.f32 %v855_v18, %v3393_v55  ;;  %v867_v26 = vmul.f32 %v855_v18, %v3396_v56  ;;  %v959_v18 = vmul.f32 %v3573_v16, %v3383_v48 }
 0x113   : > { %v897_v50 = vrot.slane %v867_v26, 1  ;;  %v987_v19 = vrot.slane %v959_v18, 1 }
 0x115   : > { %815 = vrot.lane.b32.xlu1 %v799_v32, %s4910_s10  ;;  %813 = vrot.lane.b32.xlu0 %v797_v40, %s4910_s10  ;;  %v942_v32 = vstv %s3555_s18  ;;  %v896_v40 = vrot.slane %v866_v25, 1  ;;  %v900_v53 = vsel %vm608_vm0, %v897_v50, %v899_v51  ;;  %v984_v25 = vsel %vm608_vm0, %v982_v11, %v983_v13  ;;  %s2863_s18 = spop %2862 }
 0x116   : > { %v953_v23 = vmul.f32 %v942_v32, %v3365_v33  ;;  %v954_v21 = vmul.f32 %v942_v32, %v3368_v34  ;;  %v955_v22 = vmul.f32 %v942_v32, %v3466_v37  ;;  %s2865_s23 = spop %2864 }
 0x117   : > { %v898_v54 = vsel %vm608_vm0, %v896_v40, %v897_v50 }
 0x118   : > { %v978_v60 = vrot.slane %v954_v21, 1  ;;  %v980_v62 = vrot.slane %v955_v22, 1 }
 0x119   : > { %819 = vrot.lane.b32.xlu1 %v804_v59, %s4910_s10  ;;  %817 = vrot.lane.b32.xlu0 %v802_v9, %s4910_s10  ;;  %v895_v9 = vsel %vm608_vm0, %v892_v24, %v894_v28  ;;  %v977_v59 = vrot.slane %v953_v23, 1  ;;  %v989_v28 = vsel %vm608_vm0, %v987_v19, %v988_v35 }
 0x11b   : > { %v979_v17 = vsel %vm608_vm0, %v977_v59, %v978_v60  ;;  %v266_v59 = vstv %s3351_s19  ;;  %s2867_s19 = spop %2866 }
 0x11d   : > { %903 = vrot.lane.b32.xlu1 %v885_v14, %s4911_s9  ;;  %901 = vrot.lane.b32.xlu0 %v883_v15, %s4911_s9  ;;  %v985_v14 = vrot.slane %v958_v7, 1  ;;  %v981_v15 = vsel %vm608_vm0, %v978_v60, %v980_v62  ;;  %v281_v62 = vmul.f32 %v266_v59, %v3368_v34  ;;  %v270_v7 = vstv %s3353_s21  ;;  %s4001_s21 = spop %2868 }
 0x11e   : > { %v274_v34 = vstv %s3360_s29 }
 0x11f   : > { %v986_v24 = vsel %vm608_vm0, %v983_v13, %v985_v14 }
 0x121   : > { %907 = vrot.lane.b32.xlu1 %v890_v30, %s4911_s9  ;;  %905 = vrot.lane.b32.xlu0 %v888_v31, %s4911_s9 }
 0x125   : > { %911 = vrot.lane.b32.xlu1 %v895_v9, %s4911_s9  ;;  %909 = vrot.lane.b32.xlu0 %v893_v36, %s4911_s9 }
 0x129   : > { %915 = vrot.lane.b32.xlu1 %v900_v53, %s4911_s9  ;;  %913 = vrot.lane.b32.xlu0 %v898_v54, %s4911_s9  ;;  %v3763_v53 = vrot.slane %v3276_v0, 3  ;;  %v280_v0 = vmul.f32 %v266_v59, %v3365_v33  ;;  %v283_v33 = vmul.f32 %v270_v7, %v3378_v42 }
 0x12d   : > { %999 = vrot.lane.b32.xlu1 %v981_v15, %s4912_s8  ;;  %997 = vrot.lane.b32.xlu0 %v979_v17, %s4912_s8 }
 0x12f   : > { %v335_v26 = vpop.permute.xlu1 %334  ;;  %v333_v27 = vpop.permute.xlu0 %332 }
 0x130   : > { %v356_v11 = vadd.f32 %v333_v27, %v280_v0 }
 0x131   : > { %1003 = vrot.lane.b32.xlu1 %v986_v24, %s4912_s8  ;;  %1001 = vrot.lane.b32.xlu0 %v984_v25, %s4912_s8  ;;  %v284_v25 = vmul.f32 %v274_v34, %v3383_v48 }
 0x133   : > { %v339_v16 = vpop.permute.xlu1 %338  ;;  %v337_v30 = vpop.permute.xlu0 %336 }
 0x135   : > { %1106 = vrot.lane.b32.xlu1 %v3399_v58, %s3189_s28  ;;  %1005 = vrot.lane.b32.xlu0 %v989_v28, %s4912_s8 }
 0x137   : > { %v3722_v31 = vpop.permute.xlu1 %342  ;;  %v3724_v32 = vpop.permute.xlu0 %340 }
 0x139   : > { %1110 = vrot.lane.b32.xlu1 %v3409_v63, %s3189_s28  ;;  %1108 = vrot.lane.b32.xlu0 %v3406_v61, %s3189_s28 }
 0x13b   : > { %v3730_v20 = vpop.permute.xlu1 %346  ;;  %v3732_v35 = vpop.permute.xlu0 %344 }
 0x13d   : > { %1202 = vrot.lane.b32.xlu1 %v3399_v58, %s4910_s10  ;;  %1112 = vrot.lane.b32.xlu0 %v3413_v4, %s3189_s28 }
 0x13f   : > { %v403_v36 = vpop.permute.xlu1 %402  ;;  %v401_v40 = vpop.permute.xlu0 %400 }
 0x140   : > { %v424_v17 = vadd.f32 %v401_v40, %v356_v11 }
 0x141   : > { %1206 = vrot.lane.b32.xlu1 %v3409_v63, %s4910_s10  ;;  %1204 = vrot.lane.b32.xlu0 %v3406_v61, %s4910_s10 }
 0x143   : > { %v407_v50 = vpop.permute.xlu1 %406  ;;  %v405_v51 = vpop.permute.xlu0 %404 }
 0x145   : > { %1298 = vrot.lane.b32.xlu1 %v3399_v58, %s4911_s9  ;;  %1208 = vrot.lane.b32.xlu0 %v3413_v4, %s4910_s10 }
 0x147   : > { %v411_v10 = vpop.permute.xlu1 %410  ;;  %v409_v9 = vpop.permute.xlu0 %408 }
 0x149   : > { %1302 = vrot.lane.b32.xlu1 %v3409_v63, %s4911_s9  ;;  %1300 = vrot.lane.b32.xlu0 %v3406_v61, %s4911_s9 }
 0x14b   : > { %v3750_v23 = vpop.permute.xlu1 %414  ;;  %v3752_v21 = vpop.permute.xlu0 %412 }
 0x14d   : > { %1394 = vrot.lane.b32.xlu1 %v3399_v58, %s4912_s8  ;;  %1304 = vrot.lane.b32.xlu0 %v3413_v4, %s4911_s9  ;;  %v3771_v58 = vrot.slane %v3288_v2, 3  ;;  %v3784_v2 = vrot.slane %v3297_v3, 3  ;;  %v359_v3 = vadd.f32 %v339_v16, %v283_v33 }
 0x14f   : > { %v471_v22 = vpop.permute.xlu1 %470  ;;  %v469_v52 = vpop.permute.xlu0 %468  ;;  %v427_v59 = vadd.f32 %v407_v50, %v359_v3 }
 0x150   : > { %v492_v24 = vadd.f32 %v469_v52, %v424_v17  ;;  %v3080_v17 = vld [vmem:[%s4893_s1 + $0x10] sm:$0x1f] }
 0x151   : > { %1398 = vrot.lane.b32.xlu1 %v3409_v63, %s4912_s8  ;;  %1396 = vrot.lane.b32.xlu0 %v3406_v61, %s4912_s8  ;;  %v3774_v63 = vrot.slane %v3283_v1, 3  ;;  %v282_v1 = vmul.f32 %v270_v7, %v3375_v41  ;;  %v360_v7 = vadd.f32 %v3724_v32, %v284_v25  ;;  %v3863_v3 = vrot.slane %v3080_v17, 4 }
 0x153   : > { %v475_v54 = vpop.permute.xlu1 %474  ;;  %v473_v57 = vpop.permute.xlu0 %472  ;;  %v358_v18 = vadd.f32 %v337_v30, %v282_v1 }
 0x154   : > { %v495_v16 = vadd.f32 %v475_v54, %v427_v59 }
 0x155   : > { %1567 = vrot.lane.b32.xlu1 %v3763_v53, %s3189_s28  ;;  %1400 = vrot.lane.b32.xlu0 %v3413_v4, %s4912_s8  ;;  %v357_v4 = vadd.f32 %v335_v26, %v281_v62  ;;  %v285_v26 = vmul.f32 %v274_v34, %v3386_v49  ;;  %v426_v0 = vadd.f32 %v405_v51, %v358_v18  ;;  %v3081_v18 = vld [vmem:[%s4893_s1 + $0x8] sm:$0x1f] }
 0x157   : > { %v479_v61 = vpop.permute.xlu1 %478  ;;  %v477_v60 = vpop.permute.xlu0 %476  ;;  %v425_v15 = vadd.f32 %v403_v36, %v357_v4  ;;  %v361_v62 = vadd.f32 %v3722_v31, %v285_v26  ;;  %v494_v48 = vadd.f32 %v473_v57, %v426_v0  ;;  %v428_v31 = vadd.f32 %v409_v9, %v360_v7  ;;  %v3082_v26 = vld [vmem:[%s4893_s1 + $0x18] sm:$0x1f] }
 0x159   : > { %1571 = vrot.lane.b32.xlu1 %v3771_v58, %s3189_s28  ;;  %1569 = vrot.lane.b32.xlu0 %v3774_v63, %s3189_s28  ;;  %v493_v19 = vadd.f32 %v471_v22, %v425_v15  ;;  %v429_v22 = vadd.f32 %v411_v10, %v361_v62  ;;  %v496_v57 = vadd.f32 %v477_v60, %v428_v31 }
 0x15b   : > { %v3787_v13 = vpop.permute.xlu1 %482  ;;  %v3789_v14 = vpop.permute.xlu0 %480  ;;  %v497_v54 = vadd.f32 %v479_v61, %v429_v22 }
 0x15d   : > { %1663 = vrot.lane.b32.xlu1 %v3763_v53, %s4910_s10  ;;  %1573 = vrot.lane.b32.xlu0 %v3784_v2, %s3189_s28 }
 0x15f   : > { %v539_v27 = vpop.permute.xlu1 %538  ;;  %v537_v28 = vpop.permute.xlu0 %536 }
 0x160   : > { %v561_v36 = vadd.f32 %v539_v27, %v493_v19  ;;  %v560_v40 = vadd.f32 %v537_v28, %v492_v24  ;;  %v3868_v19 = vrot.slane %v3081_v18, 4  ;;  %v3881_v27 = vrot.slane %v3082_v26, 4  ;;  %v3933_v18 = vld [vmem:[%s3358_s27] sm:$0xff] }
 0x161   : > { %1667 = vrot.lane.b32.xlu1 %v3771_v58, %s4910_s10  ;;  %1665 = vrot.lane.b32.xlu0 %v3774_v63, %s4910_s10 }
 0x162   : > { %v3806_v49 = vadd.f32 %v3595_v38, %v561_v36  ;;  %v3809_v30 = vadd.f32 %v3602_v39, %v560_v40 }
 0x163   : > { %v543_v50 = vpop.permute.xlu1 %542  ;;  %v541_v51 = vpop.permute.xlu0 %540 }
 0x164   : > { %v563_v52 = vadd.f32 %v543_v50, %v495_v16  ;;  %v562_v32 = vadd.f32 %v541_v51, %v494_v48  ;;  %v951_v51 = vstv %s2861_s7 }
 0x165   : > { %1759 = vrot.lane.b32.xlu1 %v3763_v53, %s4911_s9  ;;  %1669 = vrot.lane.b32.xlu0 %v3784_v2, %s4910_s10 }
 0x166   : > { %v3816_v38 = vadd.f32 %v3609_v46, %v563_v52  ;;  %v3819_v39 = vadd.f32 %v3617_v44, %v562_v32  ;;  %v962_v52 = vmul.f32 %v951_v51, %v3393_v55  ;;  %v963_v32 = vmul.f32 %v951_v51, %v3396_v56 }
 0x167   : > { %v547_v4 = vpop.permute.xlu1 %546  ;;  %v545_v11 = vpop.permute.xlu0 %544  ;;  %v1034_v55 = vstv %s2863_s18  ;;  %v1037_v56 = vstv %s2865_s23 }
 0x168   : > { %v565_v10 = vadd.f32 %v547_v4, %v497_v54  ;;  %v564_v9 = vadd.f32 %v545_v11, %v496_v57  ;;  %v964_v54 = vmul.f32 %v951_v51, %v3546_v29  ;;  %v992_v11 = vrot.slane %v962_v52, 1  ;;  %v3937_v51 = vld [vmem:[%s3358_s27 + $0x8] sm:$0xff] }
 0x169   : > { %1763 = vrot.lane.b32.xlu1 %v3771_v58, %s4911_s9  ;;  %1761 = vrot.lane.b32.xlu0 %v3774_v63, %s4911_s9  ;;  %v1045_v26 = vmul.f32 %v3933_v18, %v1034_v55  ;;  %v1046_v52 = vmul.f32 %v3937_v51, %v1034_v55 }
 0x16a   : > { %v3826_v1 = vadd.f32 %v3620_v45, %v565_v10  ;;  %v3829_v61 = vadd.f32 %v3623_v8, %v564_v9  ;;  %v3079_v45 = vld [vmem:[%s4893_s1] sm:$0x1f]  ;;  %v993_v10 = vrot.slane %v963_v32, 1  ;;  %v995_v9 = vrot.slane %v964_v54, 1 }
 0x16b   : > { %v3831_v46 = vpop.permute.xlu1 %550  ;;  %v3833_v44 = vpop.permute.xlu0 %548  ;;  %v3850_v8 = vrot.slane %v3079_v45, 4  ;;  %v1047_v32 = vmul.f32 %v1034_v55, %v3466_v37  ;;  %v1071_v5 = vrot.slane %v1046_v52, 2 }
 0x16c   : > { %v996_v54 = vsel %vm608_vm0, %v993_v10, %v995_v9  ;;  %v1070_v9 = vrot.slane %v1045_v26, 2 }
 0x16d   : > { %1855 = vrot.lane.b32.xlu1 %v3763_v53, %s4912_s8  ;;  %1765 = vrot.lane.b32.xlu0 %v3784_v2, %s4911_s9 }
 0x16f   : > { %v3839_v60 = vpop.permute.xlu1 %711  ;;  %v3841_v33 = vpop.permute.xlu0 %709 }
 0x170   : > { %v733_v55 = vadd.f32 %v3841_v33, %v3809_v30 }
 0x171   : > { %1859 = vrot.lane.b32.xlu1 %v3771_v58, %s4912_s8  ;;  %1857 = vrot.lane.b32.xlu0 %v3774_v63, %s4912_s8 }
 0x173   : > { %v3852_v34 = vpop.permute.xlu1 %715  ;;  %v3854_v15 = vpop.permute.xlu0 %713 }
 0x174   : > { %v736_v30 = vadd.f32 %v3852_v34, %v3816_v38  ;;  %v1072_v34 = vsel %vm1069_vm1, %v1070_v9, %v1071_v5 }
 0x175   : > { %2028 = vrot.lane.b32.xlu1 %v3850_v8, %s3189_s28  ;;  %1861 = vrot.lane.b32.xlu0 %v3784_v2, %s4912_s8 }
 0x177   : > { %v3870_v24 = vpop.permute.xlu1 %719  ;;  %v3872_v25 = vpop.permute.xlu0 %717 }
 0x179   : > { %2032 = vrot.lane.b32.xlu1 %v3863_v3, %s3189_s28  ;;  %2030 = vrot.lane.b32.xlu0 %v3868_v19, %s3189_s28 }
 0x17b   : > { %v3883_v28 = vpop.permute.xlu1 %723  ;;  %v3885_v59 = vpop.permute.xlu0 %721 }
 0x17c   : > { %4913 = vst [vmem:[#allocation6_spill] sm:$0xff] %v3883_v28  ;;  %4914 = vst [vmem:[#allocation7_spill] sm:$0xff] %v3885_v59  ;;  %v1050_v59 = vmul.f32 %v1037_v56, %v3482_v47  ;;  %v734_v28 = vadd.f32 %v3839_v60, %v3806_v49  ;;  %v735_v60 = vadd.f32 %v3854_v15, %v3819_v39 }
 0x17d   : > { %2124 = vrot.lane.b32.xlu1 %v3850_v8, %s4910_s10  ;;  %2034 = vrot.lane.b32.xlu0 %v3881_v27, %s3189_s28 }
 0x17e   : > { %v1078_v49 = vrot.slane %v1050_v59, 2 }
 0x17f   : > { %v808_v0 = vpop.permute.xlu1 %807  ;;  %v806_v36 = vpop.permute.xlu0 %805 }
 0x181   : > { %2128 = vrot.lane.b32.xlu1 %v3863_v3, %s4910_s10  ;;  %2126 = vrot.lane.b32.xlu0 %v3868_v19, %s4910_s10 }
 0x183   : > { %v3895_v40 = vpop.permute.xlu1 %811  ;;  %v3897_v62 = vpop.permute.xlu0 %809 }
 0x184   : > { %v832_v39 = vadd.f32 %v3895_v40, %v736_v30  ;;  %v831_v15 = vadd.f32 %v3897_v62, %v735_v60 }
 0x185   : > { %2220 = vrot.lane.b32.xlu1 %v3850_v8, %s4911_s9  ;;  %2130 = vrot.lane.b32.xlu0 %v3881_v27, %s4910_s10 }
 0x187   : > { %v3903_v7 = vpop.permute.xlu1 %815  ;;  %v3905_v16 = vpop.permute.xlu0 %813 }
 0x189   : > { %2224 = vrot.lane.b32.xlu1 %v3863_v3, %s4911_s9  ;;  %2222 = vrot.lane.b32.xlu0 %v3868_v19, %s4911_s9 }
 0x18b   : > { %v3911_v48 = vpop.permute.xlu1 %819  ;;  %v3913_v50 = vpop.permute.xlu0 %817 }
 0x18c   : > { %4915 = vst [vmem:[#allocation8_spill] sm:$0xff] %v3911_v48  ;;  %4916 = vst [vmem:[#allocation9_spill] sm:$0xff] %v3913_v50  ;;  %v1048_v50 = vmul.f32 %v1037_v56, %v3375_v41  ;;  %v1049_v48 = vmul.f32 %v1037_v56, %v3378_v42  ;;  %v830_v41 = vadd.f32 %v808_v0, %v734_v28  ;;  %v3968_v0 = vld [vmem:[%s3358_s27 + $0x38] sm:$0xff] }
 0x18d   : > { %2316 = vrot.lane.b32.xlu1 %v3850_v8, %s4912_s8  ;;  %2226 = vrot.lane.b32.xlu0 %v3881_v27, %s4911_s9  ;;  %v829_v42 = vadd.f32 %v806_v36, %v733_v55 }
 0x18e   : > { %v1075_v47 = vrot.slane %v1048_v50, 2  ;;  %v1076_v56 = vrot.slane %v1049_v48, 2  ;;  %v737_v50 = vadd.f32 %v3872_v25, %v3829_v61 }
 0x18f   : > { %v904_v22 = vpop.permute.xlu1 %903  ;;  %v902_v31 = vpop.permute.xlu0 %901 }
 0x190   : > { %v926_v33 = vadd.f32 %v904_v22, %v830_v41  ;;  %v925_v26 = vadd.f32 %v902_v31, %v829_v42  ;;  %v1079_v40 = vsel %vm1069_vm1, %v1076_v56, %v1078_v49  ;;  %v1077_v62 = vsel %vm1069_vm1, %v1075_v47, %v1076_v56 }
 0x191   : > { %2320 = vrot.lane.b32.xlu1 %v3863_v3, %s4912_s8  ;;  %2318 = vrot.lane.b32.xlu0 %v3868_v19, %s4912_s8  ;;  %v833_v9 = vadd.f32 %v3905_v16, %v737_v50 }
 0x193   : > { %v908_v57 = vpop.permute.xlu1 %907  ;;  %v906_v4 = vpop.permute.xlu0 %905 }
 0x194   : > { %v928_v22 = vadd.f32 %v908_v57, %v832_v39  ;;  %v927_v31 = vadd.f32 %v906_v4, %v831_v15 }
 0x195   : > { %1007 = vrot.lane.b32.xlu1 %v3639_v43, %s4912_s8  ;;  %2322 = vrot.lane.b32.xlu0 %v3881_v27, %s4912_s8  ;;  %v994_v43 = vsel %vm608_vm0, %v992_v11, %v993_v10  ;;  %v1073_v11 = vrot.slane %v1047_v32, 2 }
 0x197   : > { %v3930_v45 = vpop.permute.xlu1 %911  ;;  %v910_v17 = vpop.permute.xlu0 %909  ;;  %v1074_v38 = vsel %vm1069_vm1, %v1071_v5, %v1073_v11 }
 0x198   : > { %v929_v61 = vadd.f32 %v910_v17, %v833_v9 }
 0x199   : > { %1011 = vrot.lane.b32.xlu1 %v996_v54, %s4912_s8  ;;  %1009 = vrot.lane.b32.xlu0 %v994_v43, %s4912_s8  ;;  %v3956_v43 = vstv %s2867_s19 }
 0x19a   : > { %v3972_v59 = vmul.f32 %v3968_v0, %v3956_v43 }
 0x19b   : > { %v3952_v10 = vpop.permute.xlu1 %915  ;;  %v3954_v54 = vpop.permute.xlu0 %913 }
 0x19c   : > { %4917 = vst [vmem:[#allocation10_spill] sm:$0xff] %v3952_v10  ;;  %4918 = vst [vmem:[#allocation11_spill] sm:$0xff] %v3954_v54  ;;  %v3963_v54 = vld [vmem:[%s3358_s27 + $0x30] sm:$0xff]  ;;  %v1081_v11 = vrot.slane %v3972_v59, 2 }
 0x19d   : > { %v1051_v28 = vmul.f32 %v3963_v54, %v3956_v43 }
 0x19f   : > { %v1000_v52 = vpop.permute.xlu1 %999  ;;  %v998_v32 = vpop.permute.xlu0 %997  ;;  %v1080_v42 = vrot.slane %v1051_v28, 2 }
 0x1a0   : > { %v1022_v36 = vadd.f32 %v1000_v52, %v926_v33  ;;  %v1021_v48 = vadd.f32 %v998_v32, %v925_v26 }
 0x1a1   : > { %v1082_v26 = vsel %vm1069_vm1, %v1080_v42, %v1081_v11 }
 0x1a2   : > { %v3980_v55 = vadd.f32 %v1074_v38, %v1022_v36  ;;  %v3982_v41 = vadd.f32 %v1072_v34, %v1021_v48 }
 0x1a3   : > { %v1004_v10 = vpop.permute.xlu1 %1003  ;;  %v1002_v5 = vpop.permute.xlu0 %1001 }
 0x1a4   : > { %v1024_v30 = vadd.f32 %v1004_v10, %v928_v22  ;;  %v1023_v60 = vadd.f32 %v1002_v5, %v927_v31 }
 0x1a6   : > { %v3988_v25 = vadd.f32 %v1079_v40, %v1024_v30  ;;  %v3990_v57 = vadd.f32 %v1077_v62, %v1023_v60 }
 0x1a7   : > { %v1107_v4 = vpop.permute.xlu1 %1106  ;;  %v1006_v33 = vpop.permute.xlu0 %1005 }
 0x1a8   : > { %v1025_v52 = vadd.f32 %v1006_v33, %v929_v61  ;;  %2870 = vpush %v1107_v4 }
 0x1aa   : > { %v3995_v49 = vadd.f32 %v1082_v26, %v1025_v52 }
 0x1ab   : > { %v1111_v47 = vpop.permute.xlu1 %1110  ;;  %v1109_v56 = vpop.permute.xlu0 %1108 }
 0x1ac   : > { %4919 = vst [vmem:[#allocation12_spill] sm:$0xff] %v3995_v49  ;;  %2872 = vpush %v1109_v56 }
 0x1ad   : > { %2874 = vpush %v1111_v47 }
 0x1af   : > { %v1203_v16 = vpop.permute.xlu1 %1202  ;;  %v1113_v17 = vpop.permute.xlu0 %1112 }
 0x1b0   : > { %2876 = vpush %v1113_v17 }
 0x1b1   : > { %2878 = vpush %v1203_v16  ;;  %v4007_v16 = vld [vmem:[%s3358_s27 + $0x18] sm:$0xff] }
 0x1b3   : > { %v1207_v10 = vpop.permute.xlu1 %1206  ;;  %v1205_v32 = vpop.permute.xlu0 %1204 }
 0x1b4   : > { %2880 = vpush %v1205_v32 }
 0x1b5   : > { %2882 = vpush %v1207_v10  ;;  %v4011_v10 = vld [vmem:[%s3358_s27 + $0x20] sm:$0xff] }
 0x1b7   : > { %v1299_v28 = vpop.permute.xlu1 %1298  ;;  %v1209_v38 = vpop.permute.xlu0 %1208 }
 0x1b8   : > { %2884 = vpush %v1209_v38 }
 0x1b9   : > { %2886 = vpush %v1299_v28  ;;  %v4015_v28 = vld [vmem:[%s3358_s27 + $0x28] sm:$0xf] }
 0x1bb   : > { %v1303_v34 = vpop.permute.xlu1 %1302  ;;  %v1301_v39 = vpop.permute.xlu0 %1300 }
 0x1bc   : > { %2888 = vpush %v1301_v39 }
 0x1bd   : > { %2890 = vpush %v1303_v34 }
 0x1bf   : > { %v1395_v15 = vpop.permute.xlu1 %1394  ;;  %v1305_v36 = vpop.permute.xlu0 %1304 }
 0x1c0   : > { %2892 = vpush %v1305_v36 }
 0x1c1   : > { %2894 = vpush %v1395_v15 }
 0x1c3   : > { %v1399_v48 = vpop.permute.xlu1 %1398  ;;  %v1397_v50 = vpop.permute.xlu0 %1396 }
 0x1c4   : > { %2896 = vpush %v1397_v50 }
 0x1c5   : > { %2898 = vpush %v1399_v48 }
 0x1c7   : > { %v1568_v22 = vpop.permute.xlu1 %1567  ;;  %v1401_v31 = vpop.permute.xlu0 %1400 }
 0x1c8   : > { %2900 = vpush %v1401_v31 }
 0x1c9   : > { %2902 = vpush %v3763_v53 }
 0x1ca   : > { %2904 = vpush %v3774_v63 }
 0x1cb   : > { %v1572_v42 = vpop.permute.xlu1 %1571  ;;  %v1570_v5 = vpop.permute.xlu0 %1569  ;;  %2906 = vpush %v3771_v58 }
 0x1cc   : > { %2908 = vpush %v3784_v2 }
 0x1cd   : > { %2910 = vpush %v1568_v22 }
 0x1ce   : > { %2912 = vpush %v1570_v5 }
 0x1cf   : > { %v1664_v40 = vpop.permute.xlu1 %1663  ;;  %v1574_v62 = vpop.permute.xlu0 %1573  ;;  %2914 = vpush %v1572_v42 }
 0x1d0   : > { %2916 = vpush %v1574_v62 }
 0x1d1   : > { %2918 = vpush %v1664_v40 }
 0x1d3   : > { %v1668_v9 = vpop.permute.xlu1 %1667  ;;  %v1666_v30 = vpop.permute.xlu0 %1665 }
 0x1d4   : > { %2920 = vpush %v1666_v30 }
 0x1d5   : > { %2922 = vpush %v1668_v9 }
 0x1d7   : > { %v1760_v53 = vpop.permute.xlu1 %1759  ;;  %v1670_v60 = vpop.permute.xlu0 %1669 }
 0x1d8   : > { %2924 = vpush %v1670_v60 }
 0x1d9   : > { %s2871_s29 = spop %2870  ;;  %2926 = vpush %v1760_v53 }
 0x1da   : > { %v1115_v58 = vstv %s2871_s29 }
 0x1db   : > { %v1126_v63 = vmul.f32 %v3933_v18, %v1115_v58  ;;  %v1127_v2 = vmul.f32 %v3937_v51, %v1115_v58  ;;  %v1128_v61 = vmul.f32 %v1115_v58, %v3466_v37  ;;  %v1764_v4 = vpop.permute.xlu1 %1763  ;;  %v1762_v33 = vpop.permute.xlu0 %1761  ;;  %v4028_v58 = vld [vmem:[%s3358_s27 + $0x48] sm:$0xff] }
 0x1dc   : > { %2928 = vpush %v1762_v33 }
 0x1dd   : > { %v1150_v26 = vrot.slane %v1126_v63, 2  ;;  %v1151_v52 = vrot.slane %v1127_v2, 2  ;;  %v1153_v47 = vrot.slane %v1128_v61, 2  ;;  %s2873_s26 = spop %2872  ;;  %2930 = vpush %v1764_v4  ;;  %v4033_v4 = vld [vmem:[%s3358_s27 + $0x50] sm:$0xff] }
 0x1de   : > { %v1118_v56 = vstv %s2873_s26  ;;  %s2875_s4 = spop %2874 }
 0x1df   : > { %v1129_v17 = vmul.f32 %v4007_v16, %v1118_v56  ;;  %v1130_v32 = vmul.f32 %v4011_v10, %v1118_v56  ;;  %v1131_v37 = vmul.f32 %v4015_v28, %v1118_v56  ;;  %v1856_v38 = vpop.permute.xlu1 %1855  ;;  %v1766_v34 = vpop.permute.xlu0 %1765  ;;  %v1154_v39 = vsel %vm1069_vm1, %v1151_v52, %v1153_v47 }
 0x1e0   : > { %1172 = vrot.lane.b32.xlu1 %v1154_v39, %s3189_s28  ;;  %v1152_v15 = vsel %vm1069_vm1, %v1150_v26, %v1151_v52  ;;  %v1121_v36 = vstv %s2875_s4  ;;  %2932 = vpush %v1766_v34 }
 0x1e1   : > { %v1155_v48 = vrot.slane %v1129_v17, 2  ;;  %v1156_v50 = vrot.slane %v1130_v32, 2  ;;  %v1158_v22 = vrot.slane %v1131_v37, 2  ;;  %1170 = vrot.lane.b32.xlu0 %v1152_v15, %s3189_s28  ;;  %v1132_v31 = vmul.f32 %v3963_v54, %v1121_v36  ;;  %s2877_s5 = spop %2876  ;;  %2934 = vpush %v1856_v38 }
 0x1e2   : > { %v1133_v42 = vmul.f32 %v3968_v0, %v1121_v36  ;;  %v1134_v5 = vmul.f32 %v1121_v36, %v3520_v12  ;;  %v1124_v40 = vstv %s2877_s5  ;;  %s2879_s6 = spop %2878 }
 0x1e3   : > { %v1160_v62 = vrot.slane %v1132_v31, 2  ;;  %v1860_v9 = vpop.permute.xlu1 %1859  ;;  %v1858_v30 = vpop.permute.xlu0 %1857  ;;  %v1159_v53 = vsel %vm1069_vm1, %v1156_v50, %v1158_v22  ;;  %v1157_v60 = vsel %vm1069_vm1, %v1155_v48, %v1156_v50  ;;  %v1135_v63 = vmul.f32 %v4028_v58, %v1124_v40 }
 0x1e4   : > { %v1161_v2 = vrot.slane %v1133_v42, 2  ;;  %v1163_v61 = vrot.slane %v1134_v5, 2  ;;  %1176 = vrot.lane.b32.xlu1 %v1159_v53, %s3189_s28  ;;  %v1136_v12 = vmul.f32 %v4033_v4, %v1124_v40  ;;  %v1137_v33 = vmul.f32 %v1124_v40, %v3546_v29  ;;  %2936 = vpush %v1858_v30  ;;  %v4043_v29 = vld [vmem:[%s3358_s27 + $0x10] sm:$0xf] }
 0x1e5   : > { %1174 = vrot.lane.b32.xlu0 %v1157_v60, %s3189_s28  ;;  %v1165_v26 = vrot.slane %v1135_v63, 2  ;;  %v1211_v52 = vstv %s2879_s6  ;;  %s2881_s11 = spop %2880  ;;  %2938 = vpush %v1860_v9 }
 0x1e6   : > { %v1166_v47 = vrot.slane %v1136_v12, 2  ;;  %v1168_v56 = vrot.slane %v1137_v33, 2  ;;  %v1164_v17 = vsel %vm1069_vm1, %v1161_v2, %v1163_v61  ;;  %v1162_v32 = vsel %vm1069_vm1, %v1160_v62, %v1161_v2  ;;  %s2883_s7 = spop %2882  ;;  %v4060_v33 = vld [vmem:[%s3358_s27 + $0x40] sm:$0xf] }
 0x1e7   : > { %v2029_v37 = vpop.permute.xlu1 %2028  ;;  %v1862_v38 = vpop.permute.xlu0 %1861  ;;  %v1222_v34 = vmul.f32 %v3933_v18, %v1211_v52  ;;  %v1223_v39 = vmul.f32 %v3937_v51, %v1211_v52  ;;  %v1224_v15 = vmul.f32 %v4043_v29, %v1211_v52  ;;  %v1214_v36 = vstv %s2881_s11 }
 0x1e8   : > { %1180 = vrot.lane.b32.xlu1 %v1164_v17, %s3189_s28  ;;  %v1226_v48 = vmul.f32 %v4011_v10, %v1214_v36  ;;  %v1169_v31 = vsel %vm1069_vm1, %v1166_v47, %v1168_v56  ;;  %v1227_v42 = vmul.f32 %v4015_v28, %v1214_v36  ;;  %2940 = vpush %v1862_v38  ;;  %v1217_v9 = vstv %s2883_s7 }
 0x1e9   : > { %1178 = vrot.lane.b32.xlu0 %v1162_v32, %s3189_s28  ;;  %v1247_v50 = vrot.slane %v1223_v39, 2  ;;  %v1249_v22 = vrot.slane %v1224_v15, 2  ;;  %s2885_s18 = spop %2884  ;;  %v1246_v5 = vrot.slane %v1222_v34, 2  ;;  %v1167_v40 = vsel %vm1069_vm1, %v1165_v26, %v1166_v47  ;;  %2942 = vpush %v3850_v8  ;;  %v4070_v32 = vld [vmem:[%s3358_s27 + $0x58] sm:$0xf] }
 0x1ea   : > { %v1225_v62 = vmul.f32 %v4007_v16, %v1214_v36  ;;  %2944 = vpush %v3868_v19  ;;  %v1252_v60 = vrot.slane %v1226_v48, 2  ;;  %v1220_v63 = vstv %s2885_s18  ;;  %v1254_v2 = vrot.slane %v1227_v42, 2  ;;  %s2887_s23 = spop %2886 }
 0x1eb   : > { %v2033_v30 = vpop.permute.xlu1 %2032  ;;  %v2031_v53 = vpop.permute.xlu0 %2030  ;;  %v1250_v61 = vsel %vm1069_vm1, %v1247_v50, %v1249_v22  ;;  %v1229_v12 = vmul.f32 %v3968_v0, %v1217_v9  ;;  %v1230_v8 = vmul.f32 %v4060_v33, %v1217_v9  ;;  %2946 = vpush %v3863_v3  ;;  %v1248_v19 = vsel %vm1069_vm1, %v1246_v5, %v1247_v50 }
 0x1ec   : > { %1184 = vrot.lane.b32.xlu1 %v1169_v31, %s3189_s28  ;;  %v1251_v26 = vrot.slane %v1225_v62, 2  ;;  %v1228_v52 = vmul.f32 %v3963_v54, %v1217_v9  ;;  %2948 = vpush %v3881_v27  ;;  %v1232_v17 = vmul.f32 %v4033_v4, %v1220_v63  ;;  %v1233_v38 = vmul.f32 %v4070_v32, %v1220_v63 }
 0x1ed   : > { %1182 = vrot.lane.b32.xlu0 %v1167_v40, %s3189_s28  ;;  %2950 = vpush %v2029_v37  ;;  %v1257_v3 = vrot.slane %v1229_v12, 2  ;;  %v1259_v34 = vrot.slane %v1230_v8, 2  ;;  %v1255_v39 = vsel %vm1069_vm1, %v1252_v60, %v1254_v2  ;;  %v1231_v37 = vmul.f32 %v4028_v58, %v1220_v63  ;;  %s2889_s19 = spop %2888 }
 0x1ee   : > { %2952 = vpush %v2031_v53  ;;  %v1256_v27 = vrot.slane %v1228_v52, 2  ;;  %v1253_v15 = vsel %vm1069_vm1, %v1251_v26, %v1252_v60  ;;  %v1307_v36 = vstv %s2887_s23  ;;  %v1262_v22 = vrot.slane %v1232_v17, 2  ;;  %s2891_s29 = spop %2890 }
 0x1ef   : > { %v2125_v47 = vpop.permute.xlu1 %2124  ;;  %v2035_v56 = vpop.permute.xlu0 %2034  ;;  %2954 = vpush %v2033_v30  ;;  %v1264_v31 = vrot.slane %v1233_v38, 2  ;;  %v1260_v42 = vsel %vm1069_vm1, %v1257_v3, %v1259_v34  ;;  %v1319_v5 = vmul.f32 %v3937_v51, %v1307_v36  ;;  %v1320_v40 = vmul.f32 %v4043_v29, %v1307_v36 }
 0x1f0   : > { %1268 = vrot.lane.b32.xlu1 %v1250_v61, %s4910_s10  ;;  %2956 = vpush %v2035_v56  ;;  %v1310_v62 = vstv %s2889_s19  ;;  %v1261_v9 = vrot.slane %v1231_v37, 2  ;;  %v1258_v30 = vsel %vm1069_vm1, %v1256_v27, %v1257_v3  ;;  %v1318_v53 = vmul.f32 %v3933_v18, %v1307_v36 }
 0x1f1   : > { %1266 = vrot.lane.b32.xlu0 %v1248_v19, %s4910_s10  ;;  %2958 = vpush %v2125_v47  ;;  %v1322_v2 = vmul.f32 %v4011_v10, %v1310_v62  ;;  %v1343_v61 = vrot.slane %v1319_v5, 2  ;;  %v1345_v12 = vrot.slane %v1320_v40, 2  ;;  %v1265_v8 = vsel %vm1069_vm1, %v1262_v22, %v1264_v31  ;;  %s2893_s26 = spop %2892 }
 0x1f2   : > { %v1323_v26 = vmul.f32 %v4015_v28, %v1310_v62  ;;  %v1342_v19 = vrot.slane %v1318_v53, 2  ;;  %v1263_v52 = vsel %vm1069_vm1, %v1261_v9, %v1262_v22  ;;  %v1321_v47 = vmul.f32 %v4007_v16, %v1310_v62  ;;  %s2895_s4 = spop %2894 }
 0x1f3   : > { %v2129_v48 = vpop.permute.xlu1 %2128  ;;  %v2127_v50 = vpop.permute.xlu0 %2126  ;;  %v1313_v56 = vstv %s2891_s29  ;;  %v1348_v3 = vrot.slane %v1322_v2, 2  ;;  %v1316_v34 = vstv %s2893_s26  ;;  %v1346_v27 = vsel %vm1069_vm1, %v1343_v61, %v1345_v12 }
 0x1f4   : > { %1272 = vrot.lane.b32.xlu1 %v1255_v39, %s4910_s10  ;;  %2960 = vpush %v2127_v50  ;;  %v1350_v39 = vrot.slane %v1323_v26, 2  ;;  %v1326_v37 = vmul.f32 %v4060_v33, %v1313_v56  ;;  %v1347_v36 = vrot.slane %v1321_v47, 2  ;;  %v1324_v50 = vmul.f32 %v3963_v54, %v1313_v56 }
 0x1f5   : > { %1270 = vrot.lane.b32.xlu0 %v1253_v15, %s4910_s10  ;;  %2962 = vpush %v2129_v48  ;;  %v1325_v15 = vmul.f32 %v3968_v0, %v1313_v56  ;;  %v1344_v48 = vsel %vm1069_vm1, %v1342_v19, %v1343_v61  ;;  %v1329_v5 = vmul.f32 %v4070_v32, %v1316_v34  ;;  %s2897_s5 = spop %2896 }
 0x1f6   : > { %v1355_v62 = vrot.slane %v1326_v37, 2  ;;  %v1351_v9 = vsel %vm1069_vm1, %v1348_v3, %v1350_v39  ;;  %v1349_v53 = vsel %vm1069_vm1, %v1347_v36, %v1348_v3  ;;  %v1406_v47 = vstv %s2897_s5  ;;  %s2899_s6 = spop %2898 }
 0x1f7   : > { %v2221_v60 = vpop.permute.xlu1 %2220  ;;  %v2131_v63 = vpop.permute.xlu0 %2130  ;;  %v1353_v40 = vrot.slane %v1325_v15, 2  ;;  %v1419_v37 = vmul.f32 %v4015_v28, %v1406_v47 }
 0x1f8   : > { %1276 = vrot.lane.b32.xlu1 %v1260_v42, %s4910_s10  ;;  %2964 = vpush %v2131_v63  ;;  %v1328_v42 = vmul.f32 %v4033_v4, %v1316_v34  ;;  %v1403_v63 = vstv %s2895_s4 }
 0x1f9   : > { %1274 = vrot.lane.b32.xlu0 %v1258_v30, %s4910_s10  ;;  %2966 = vpush %v2221_v60  ;;  %v1352_v30 = vrot.slane %v1324_v50, 2  ;;  %v1327_v60 = vmul.f32 %v4028_v58, %v1316_v34  ;;  %v1356_v26 = vsel %vm1069_vm1, %v1353_v40, %v1355_v62  ;;  %v1415_v19 = vmul.f32 %v3937_v51, %v1403_v63  ;;  %s2901_s11 = spop %2900 }
 0x1fa   : > { %v1358_v12 = vrot.slane %v1328_v42, 2  ;;  %s4112_s7 = spop %2902  ;;  %v1418_v34 = vmul.f32 %v4011_v10, %v1406_v47  ;;  %v1417_v50 = vmul.f32 %v4007_v16, %v1406_v47  ;;  %v1412_v42 = vstv %s2901_s11 }
 0x1fb   : > { %v2225_v17 = vpop.permute.xlu1 %2224  ;;  %v2223_v38 = vpop.permute.xlu0 %2222  ;;  %v1357_v56 = vrot.slane %v1327_v60, 2  ;;  %v1439_v39 = vrot.slane %v1415_v19, 2  ;;  %s4119_s18 = spop %2904 }
 0x1fc   : > { %1280 = vrot.lane.b32.xlu1 %v1265_v8, %s4910_s10  ;;  %2968 = vpush %v2223_v38  ;;  %v1360_v8 = vrot.slane %v1329_v5, 2  ;;  %v1414_v38 = vmul.f32 %v3933_v18, %v1403_v63  ;;  %s4123_s23 = spop %2906  ;;  %v1446_v5 = vrot.slane %v1419_v37, 2 }
 0x1fd   : > { %1278 = vrot.lane.b32.xlu0 %v1263_v52, %s4910_s10  ;;  %2970 = vpush %v2225_v17  ;;  %v1416_v52 = vmul.f32 %v4043_v29, %v1403_v63  ;;  %v1354_v17 = vsel %vm1069_vm1, %v1352_v30, %v1353_v40  ;;  %s4130_s19 = spop %2908  ;;  %v1443_v30 = vrot.slane %v1417_v50, 2  ;;  %v1424_v63 = vmul.f32 %v4033_v4, %v1412_v42 }
 0x1fe   : > { %v1361_v15 = vsel %vm1069_vm1, %v1358_v12, %v1360_v8  ;;  %v1438_v36 = vrot.slane %v1414_v38, 2  ;;  %s2911_s29 = spop %2910 }
 0x1ff   : > { %v2317_v22 = vpop.permute.xlu1 %2316  ;;  %v2227_v31 = vpop.permute.xlu0 %2226  ;;  %v1576_v47 = vstv %s2911_s29  ;;  %s2913_s26 = spop %2912 }
 0x200   : > { %1364 = vrot.lane.b32.xlu1 %v1346_v27, %s4911_s9  ;;  %2972 = vpush %v2227_v31  ;;  %v1441_v27 = vrot.slane %v1416_v52, 2  ;;  %v1444_v31 = vrot.slane %v1418_v34, 2  ;;  %v1423_v52 = vmul.f32 %v4028_v58, %v1412_v42  ;;  %v1589_v34 = vmul.f32 %v4043_v29, %v1576_v47  ;;  %s2915_s4 = spop %2914 }
 0x201   : > { %1362 = vrot.lane.b32.xlu0 %v1344_v48, %s4911_s9  ;;  %2974 = vpush %v2317_v22  ;;  %v1359_v48 = vsel %vm1069_vm1, %v1357_v56, %v1358_v12  ;;  %v1409_v22 = vstv %s2899_s6  ;;  %v1454_v56 = vrot.slane %v1424_v63, 2  ;;  %v1579_v37 = vstv %s2913_s26  ;;  %s2917_s5 = spop %2916 }
 0x202   : > { %v1442_v40 = vsel %vm1069_vm1, %v1439_v39, %v1441_v27  ;;  %v1421_v62 = vmul.f32 %v3968_v0, %v1409_v22  ;;  %v1420_v60 = vmul.f32 %v3963_v54, %v1409_v22  ;;  %v1447_v8 = vsel %vm1069_vm1, %v1444_v31, %v1446_v5  ;;  %s2919_s6 = spop %2918 }
 0x203   : > { %v2319_v2 = vpop.permute.xlu0 %2318  ;;  %v2321_v61 = vpop.permute.xlu1 %2320  ;;  %v1445_v19 = vsel %vm1069_vm1, %v1443_v30, %v1444_v31  ;;  %v1591_v31 = vmul.f32 %v4011_v10, %v1579_v37 }
 0x204   : > { %1368 = vrot.lane.b32.xlu1 %v1351_v9, %s4911_s9  ;;  %2976 = vpush %v2319_v2  ;;  %v1422_v9 = vmul.f32 %v4060_v33, %v1409_v22  ;;  %v1425_v2 = vmul.f32 %v4070_v32, %v1412_v42  ;;  %v1614_v22 = vrot.slane %v1589_v34, 3  ;;  %v1592_v42 = vmul.f32 %v4015_v28, %v1579_v37 }
 0x205   : > { %1366 = vrot.lane.b32.xlu0 %v1349_v53, %s4911_s9  ;;  %2978 = vpush %v2321_v61  ;;  %v1440_v53 = vsel %vm1069_vm1, %v1438_v36, %v1439_v39  ;;  %v1449_v61 = vrot.slane %v1421_v62, 2  ;;  %v1453_v39 = vrot.slane %v1423_v52, 2  ;;  %v1590_v62 = vmul.f32 %v4007_v16, %v1579_v37  ;;  %s2921_s11 = spop %2920 }
 0x206   : > { %v1451_v12 = vrot.slane %v1422_v9, 2  ;;  %v1617_v30 = vrot.slane %v1591_v31, 3  ;;  %v1675_v31 = vstv %s2921_s11  ;;  %s2923_s29 = spop %2922 }
 0x207   : > { %v2323_v3 = vpop.permute.xlu0 %2322 }
 0x208   : > { %1372 = vrot.lane.b32.xlu1 %v1356_v26, %s4911_s9  ;;  %2980 = vpush %v2323_v3  ;;  %v1448_v26 = vrot.slane %v1420_v60, 2  ;;  %v1452_v38 = vsel %vm1069_vm1, %v1449_v61, %v1451_v12  ;;  %v1588_v3 = vmul.f32 %v3937_v51, %v1576_v47 }
 0x209   : > { %1370 = vrot.lane.b32.xlu0 %v1354_v17, %s4911_s9  ;;  %v1456_v17 = vrot.slane %v1425_v2, 2  ;;  %v1616_v2 = vrot.slane %v1590_v62, 3  ;;  %s2925_s26 = spop %2924 }
 0x20a   : > { %v1450_v27 = vsel %vm1069_vm1, %v1448_v26, %v1449_v61  ;;  %v1612_v50 = vrot.slane %v1588_v3, 3 }
 0x20b   : > { %v1457_v36 = vsel %vm1069_vm1, %v1454_v56, %v1456_v17  ;;  %v1618_v3 = vsel %vm1530_vm2, %v1616_v2, %v1617_v30 }
 0x20c   : > { %1376 = vrot.lane.b32.xlu1 %v1361_v15, %s4911_s9  ;;  %v1587_v15 = vmul.f32 %v3933_v18, %v1576_v47  ;;  %v1615_v60 = vsel %vm1530_vm2, %v1612_v50, %v1614_v22 }
 0x20d   : > { %1374 = vrot.lane.b32.xlu0 %v1359_v48, %s4911_s9  ;;  %v1582_v48 = vstv %s2915_s4  ;;  %s2927_s4 = spop %2926 }
 0x20e   : > { %v1611_v5 = vrot.slane %v1587_v15, 3  ;;  %v1594_v9 = vmul.f32 %v3968_v0, %v1582_v48  ;;  %v1595_v63 = vmul.f32 %v4060_v33, %v1582_v48  ;;  %v1593_v12 = vmul.f32 %v3963_v54, %v1582_v48 }
 0x210   : > { %1460 = vrot.lane.b32.xlu1 %v1442_v40, %s4912_s8  ;;  %v1455_v40 = vsel %vm1069_vm1, %v1453_v39, %v1454_v56  ;;  %v1613_v61 = vsel %vm1530_vm2, %v1611_v5, %v1612_v50  ;;  %v1622_v26 = vrot.slane %v1594_v9, 3  ;;  %v1624_v52 = vrot.slane %v1595_v63, 3 }
 0x211   : > { %1458 = vrot.lane.b32.xlu0 %v1440_v53, %s4912_s8  ;;  %v1619_v53 = vrot.slane %v1592_v42, 3  ;;  %v738_v42 = vadd.f32 %v3870_v24, %v3826_v1  ;;  %v1687_v9 = vmul.f32 %v4011_v10, %v1675_v31  ;;  %v1686_v1 = vmul.f32 %v4007_v16, %v1675_v31 }
 0x213   : > { %v1620_v47 = vsel %vm1530_vm2, %v1617_v30, %v1619_v53  ;;  %v1688_v30 = vmul.f32 %v4015_v28, %v1675_v31  ;;  %v1678_v53 = vstv %s2923_s29 }
 0x214   : > { %1464 = vrot.lane.b32.xlu1 %v1447_v8, %s4912_s8  ;;  %v1585_v8 = vstv %s2917_s5  ;;  %s2929_s5 = spop %2928 }
 0x215   : > { %1462 = vrot.lane.b32.xlu0 %v1445_v19, %s4912_s8  ;;  %v1672_v19 = vstv %s2919_s6  ;;  %v1597_v56 = vmul.f32 %v4033_v4, %v1585_v8  ;;  %v1598_v17 = vmul.f32 %v4070_v32, %v1585_v8  ;;  %v1596_v34 = vmul.f32 %v4028_v58, %v1585_v8  ;;  %v1008_v8 = vpop.permute.xlu1 %1007  ;;  %s2931_s6 = spop %2930 }
 0x216   : > { %v1684_v39 = vmul.f32 %v3937_v51, %v1672_v19  ;;  %v1683_v22 = vmul.f32 %v3933_v18, %v1672_v19  ;;  %s2933_s11 = spop %2932 }
 0x217   : > { %v1627_v15 = vrot.slane %v1597_v56, 3  ;;  %v1629_v37 = vrot.slane %v1598_v17, 3  ;;  %v1626_v48 = vrot.slane %v1596_v34, 3  ;;  %v1689_v56 = vmul.f32 %v3963_v54, %v1678_v53  ;;  %s2935_s29 = spop %2934 }
 0x218   : > { %1468 = vrot.lane.b32.xlu1 %v1452_v38, %s4912_s8  ;;  %v1621_v38 = vrot.slane %v1593_v12, 3  ;;  %v1708_v5 = vrot.slane %v1684_v39, 3  ;;  %v1707_v63 = vrot.slane %v1683_v22, 3  ;;  %v1690_v12 = vmul.f32 %v3968_v0, %v1678_v53 }
 0x219   : > { %1466 = vrot.lane.b32.xlu0 %v1450_v27, %s4912_s8  ;;  %v1685_v27 = vmul.f32 %v4043_v29, %v1672_v19  ;;  %v1630_v62 = vsel %vm1530_vm2, %v1627_v15, %v1629_v37  ;;  %v1628_v2 = vsel %vm1530_vm2, %v1626_v48, %v1627_v15  ;;  %v1768_v34 = vstv %s2927_s4 }
 0x21a   : > { %v1623_v50 = vsel %vm1530_vm2, %v1621_v38, %v1622_v26  ;;  %v1780_v22 = vmul.f32 %v3937_v51, %v1768_v34  ;;  %v1781_v31 = vmul.f32 %v4043_v29, %v1768_v34 }
 0x21c   : > { %1472 = vrot.lane.b32.xlu1 %v1457_v36, %s4912_s8  ;;  %v1625_v36 = vsel %vm1530_vm2, %v1622_v26, %v1624_v52  ;;  %v1713_v26 = vrot.slane %v1687_v9, 3  ;;  %v1691_v52 = vmul.f32 %v4060_v33, %v1678_v53  ;;  %v1804_v59 = vrot.slane %v1780_v22, 3 }
 0x21d   : > { %1470 = vrot.lane.b32.xlu0 %v1455_v40, %s4912_s8  ;;  %v1710_v40 = vrot.slane %v1685_v27, 3 }
 0x21e   : > { %v1720_v39 = vrot.slane %v1691_v52, 3 }
 0x21f   : > { %v1711_v19 = vsel %vm1530_vm2, %v1708_v5, %v1710_v40 }
 0x220   : > { %1633 = vrot.lane.b32.xlu1 %v1615_v60, %s3189_s28  ;;  %v834_v60 = vadd.f32 %v3903_v7, %v738_v42  ;;  %v1715_v7 = vrot.slane %v1688_v30, 3 }
 0x221   : > { %1631 = vrot.lane.b32.xlu0 %v1613_v61, %s3189_s28  ;;  %v1053_v61 = vmul.f32 %v4060_v33, %v3956_v43  ;;  %v1681_v43 = vstv %s2925_s26  ;;  %s2937_s26 = spop %2936 }
 0x222   : > { %v930_v24 = vadd.f32 %v3930_v45, %v834_v60  ;;  %v1709_v45 = vsel %vm1530_vm2, %v1707_v63, %v1708_v5  ;;  %v1716_v27 = vsel %vm1530_vm2, %v1713_v26, %v1715_v7  ;;  %v1693_v15 = vmul.f32 %v4033_v4, %v1681_v43  ;;  %s2939_s4 = spop %2938 }
 0x223   : > { %v1083_v17 = vrot.slane %v1053_v61, 2  ;;  %v1694_v37 = vmul.f32 %v4070_v32, %v1681_v43  ;;  %v1779_v60 = vmul.f32 %v3933_v18, %v1768_v34  ;;  %v1771_v63 = vstv %s2929_s5  ;;  %s2941_s5 = spop %2940 }
 0x224   : > { %1637 = vrot.lane.b32.xlu1 %v1620_v47, %s3189_s28  ;;  %v1712_v47 = vrot.slane %v1686_v1, 3  ;;  %v1026_v38 = vadd.f32 %v1008_v8, %v930_v24  ;;  %v1723_v5 = vrot.slane %v1693_v15, 3  ;;  %v1783_v1 = vmul.f32 %v4011_v10, %v1771_v63 }
 0x225   : > { %1635 = vrot.lane.b32.xlu0 %v1618_v3, %s3189_s28  ;;  %v1718_v3 = vrot.slane %v1690_v12, 3  ;;  %v1084_v42 = vsel %vm1069_vm1, %v1081_v11, %v1083_v17  ;;  %v1725_v40 = vrot.slane %v1694_v37, 3  ;;  %v1784_v24 = vmul.f32 %v4015_v28, %v1771_v63 }
 0x226   : > { %v1714_v48 = vsel %vm1530_vm2, %v1712_v47, %v1713_v26  ;;  %v4211_v9 = vadd.f32 %v1084_v42, %v1026_v38  ;;  %v1774_v61 = vstv %s2931_s6  ;;  %v1803_v12 = vrot.slane %v1779_v60, 3  ;;  %s2943_s6 = spop %2942 }
 0x227   : > { %v1726_v11 = vsel %vm1530_vm2, %v1723_v5, %v1725_v40  ;;  %v1782_v18 = vmul.f32 %v4007_v16, %v1771_v63  ;;  %v1786_v26 = vmul.f32 %v3968_v0, %v1774_v61  ;;  %v1809_v7 = vrot.slane %v1783_v1, 3  ;;  %v4244_v63 = vld [vmem:[%s3358_s27] sm:$0xff] }
 0x228   : > { %1641 = vrot.lane.b32.xlu1 %v1625_v36, %s3189_s28  ;;  %v1717_v36 = vrot.slane %v1689_v56, 3  ;;  %4920 = vst [vmem:[#allocation13_spill] sm:$0xff] %v4211_v9  ;;  %v1787_v47 = vmul.f32 %v4060_v33, %v1774_v61  ;;  %v1805_v56 = vsel %vm1530_vm2, %v1803_v12, %v1804_v59  ;;  %v1777_v17 = vstv %s2933_s11  ;;  %s4249_s11 = spop %2944 }
 0x229   : > { %1639 = vrot.lane.b32.xlu0 %v1623_v50, %s3189_s28  ;;  %v1692_v50 = vmul.f32 %v4028_v58, %v1681_v43  ;;  %v1785_v43 = vmul.f32 %v3963_v54, %v1774_v61  ;;  %v1814_v38 = vrot.slane %v1786_v26, 3  ;;  %v1790_v15 = vmul.f32 %v4070_v32, %v1777_v17 }
 0x22a   : > { %v1719_v53 = vsel %vm1530_vm2, %v1717_v36, %v1718_v3  ;;  %v1816_v34 = vrot.slane %v1787_v47, 3  ;;  %v1873_v47 = vstv %s2941_s5 }
 0x22b   : > { %v1722_v30 = vrot.slane %v1692_v50, 3  ;;  %v1813_v37 = vrot.slane %v1785_v43, 3  ;;  %v1956_v43 = vstv %s2943_s6 }
 0x22c   : > { %1645 = vrot.lane.b32.xlu1 %v1630_v62, %s3189_s28  ;;  %v1721_v62 = vsel %vm1530_vm2, %v1718_v3, %v1720_v39  ;;  %v1864_v3 = vstv %s2935_s29  ;;  %v1817_v40 = vsel %vm1530_vm2, %v1814_v38, %v1816_v34 }
 0x22d   : > { %1643 = vrot.lane.b32.xlu0 %v1628_v2, %s3189_s28  ;;  %v1806_v2 = vrot.slane %v1781_v31, 3  ;;  %v1724_v8 = vsel %vm1530_vm2, %v1722_v30, %v1723_v5  ;;  %v1876_v50 = vmul.f32 %v3937_v51, %v1864_v3  ;;  %v1877_v22 = vmul.f32 %v4043_v29, %v1864_v3 }
 0x22e   : > { %v1867_v31 = vstv %s2937_s26  ;;  %v1821_v5 = vrot.slane %v1790_v15, 3  ;;  %v278_v30 = vstv %s3362_s30  ;;  %v1815_v60 = vsel %vm1530_vm2, %v1813_v37, %v1814_v38  ;;  %s4259_s30 = spop %2946  ;;  %v4278_v15 = vpop.permute.xlu1 %1011 }
 0x22f   : > { %v1807_v52 = vsel %vm1530_vm2, %v1804_v59, %v1806_v2  ;;  %v1875_v51 = vmul.f32 %v4244_v63, %v1864_v3  ;;  %v1900_v59 = vrot.slane %v1876_v50, 3  ;;  %v1878_v2 = vmul.f32 %v4007_v16, %v1867_v31  ;;  %s4264_s29 = spop %2948 }
 0x230   : > { %1729 = vrot.lane.b32.xlu1 %v1711_v19, %s4910_s10  ;;  %v1811_v19 = vrot.slane %v1784_v24, 3  ;;  %v1902_v1 = vrot.slane %v1877_v22, 3  ;;  %v1880_v24 = vmul.f32 %v4015_v28, %v1867_v31  ;;  %s2951_s26 = spop %2950 }
 0x231   : > { %1727 = vrot.lane.b32.xlu0 %v1709_v45, %s4910_s10  ;;  %v1808_v45 = vrot.slane %v1782_v18, 3 }
 0x232   : > { %v1812_v39 = vsel %vm1530_vm2, %v1809_v7, %v1811_v19  ;;  %v1899_v19 = vrot.slane %v1875_v51, 3 }
 0x233   : > { %v1810_v36 = vsel %vm1530_vm2, %v1808_v45, %v1809_v7  ;;  %v286_v7 = vmul.f32 %v4028_v58, %v278_v30  ;;  %v1904_v45 = vrot.slane %v1878_v2, 3 }
 0x234   : > { %1733 = vrot.lane.b32.xlu1 %v1716_v27, %s4910_s10  ;;  %v1789_v27 = vmul.f32 %v4033_v4, %v1777_v17  ;;  %v1901_v37 = vsel %vm1530_vm2, %v1899_v19, %v1900_v59 }
 0x235   : > { %1731 = vrot.lane.b32.xlu0 %v1714_v48, %s4910_s10  ;;  %v1788_v48 = vmul.f32 %v4028_v58, %v1777_v17  ;;  %v1907_v17 = vrot.slane %v1880_v24, 3  ;;  %v4291_v22 = vadd.f32 %v3732_v35, %v286_v7  ;;  %v2037_v35 = vstv %s2951_s26 }
 0x236   : > { %v1819_v42 = vrot.slane %v1789_v27, 3  ;;  %v4276_v27 = vmul.f32 %v4070_v32, %v1873_v47 }
 0x238   : > { %1737 = vrot.lane.b32.xlu1 %v1721_v62, %s4910_s10  ;;  %v1870_v62 = vstv %s2939_s4  ;;  %v1822_v18 = vsel %vm1530_vm2, %v1819_v42, %v1821_v5  ;;  %v4299_v5 = vmul.f32 %v4043_v29, %v1956_v43  ;;  %v1917_v51 = vrot.slane %v4276_v27, 3  ;;  %s2953_s4 = spop %2952 }
 0x239   : > { %1735 = vrot.lane.b32.xlu0 %v1719_v53, %s4910_s10  ;;  %v1818_v53 = vrot.slane %v1788_v48, 3  ;;  %v1882_v61 = vmul.f32 %v3968_v0, %v1870_v62  ;;  %v1883_v12 = vmul.f32 %v4060_v33, %v1870_v62  ;;  %v1881_v26 = vmul.f32 %v3963_v54, %v1870_v62  ;;  %v4285_v48 = vld [vmem:[%s3358_s27 + $0x8] sm:$0xff]  ;;  %s2955_s5 = spop %2954 }
 0x23a   : > { %v1903_v54 = vsel %vm1530_vm2, %v1900_v59, %v1902_v1  ;;  %v4288_v50 = vmul.f32 %v4285_v48, %v1956_v43  ;;  %v2049_v7 = vmul.f32 %v4285_v48, %v2037_v35  ;;  %v3193_v27 = vmov 0   ;;  %s2957_s6 = spop %2956 }
 0x23b   : > { %v1910_v38 = vrot.slane %v1882_v61, 3  ;;  %v1912_v3 = vrot.slane %v1883_v12, 3  ;;  %v1909_v34 = vrot.slane %v1881_v26, 3  ;;  %v1962_v61 = vstv %s4259_s30  ;;  %3046 = vset.pattern.permute.xlu1 %v3193_v27  ;;  %3045 = vset.pattern.permute.xlu0 %v3193_v27 }
 0x23c   : > { %1741 = vrot.lane.b32.xlu1 %v1726_v11, %s4910_s10  ;;  %v1879_v11 = vmul.f32 %v4011_v10, %v1867_v31  ;;  %v2048_v26 = vmul.f32 %v4244_v63, %v2037_v35  ;;  %v2043_v49 = vstv %s2955_s5 }
 0x23d   : > { %1739 = vrot.lane.b32.xlu0 %v1724_v8, %s4910_s10  ;;  %v287_v8 = vmul.f32 %v4033_v4, %v278_v30  ;;  %v1911_v59 = vsel %vm1530_vm2, %v1909_v34, %v1910_v38 }
 0x23f   : > { %v363_v0 = vadd.f32 %v3730_v20, %v287_v8  ;;  %v4273_v20 = vmul.f32 %v4033_v4, %v1873_v47  ;;  %v1995_v8 = vrot.slane %v4299_v5, 4  ;;  %v2072_v5 = vrot.slane %v2048_v26, 4 }
 0x240   : > { %1825 = vrot.lane.b32.xlu1 %v1807_v52, %s4911_s9  ;;  %v1820_v52 = vsel %vm1530_vm2, %v1818_v53, %v1819_v42  ;;  %v4296_v42 = vpop.permute.xlu0 %1009  ;;  %v1913_v53 = vsel %vm1530_vm2, %v1910_v38, %v1912_v3 }
 0x241   : > { %1823 = vrot.lane.b32.xlu0 %v1805_v56, %s4911_s9  ;;  %v1905_v56 = vrot.slane %v1879_v11, 3  ;;  %v4294_v31 = vadd.f32 %v3750_v23, %v363_v0  ;;  %v2040_v0 = vstv %s2953_s4 }
 0x242   : > { %v2053_v11 = vmul.f32 %v4015_v28, %v2040_v0 }
 0x243   : > { %v1908_v62 = vsel %vm1530_vm2, %v1905_v56, %v1907_v17  ;;  %v1906_v30 = vsel %vm1530_vm2, %v1904_v45, %v1905_v56  ;;  %v4331_v45 = vld [vmem:[%s3358_s27 + $0x30] sm:$0xff] }
 0x244   : > { %1829 = vrot.lane.b32.xlu1 %v1812_v39, %s4911_s9  ;;  %v4270_v39 = vmul.f32 %v4028_v58, %v1873_v47  ;;  %v2050_v47 = vmul.f32 %v4043_v29, %v2037_v35  ;;  %v1973_v56 = vmul.f32 %v4331_v45, %v1962_v61 }
 0x245   : > { %1827 = vrot.lane.b32.xlu0 %v1810_v36, %s4911_s9  ;;  %v4282_v36 = vmul.f32 %v4244_v63, %v1956_v43  ;;  %v4335_v43 = vld [vmem:[%s3358_s27 + $0x38] sm:$0xff] }
 0x246   : > { %v1914_v23 = vrot.slane %v4270_v39, 3  ;;  %v1974_v17 = vmul.f32 %v4335_v43, %v1962_v61 }
 0x248   : > { %1833 = vrot.lane.b32.xlu1 %v1817_v40, %s4911_s9  ;;  %v1959_v40 = vstv %s4249_s11  ;;  %v2003_v1 = vrot.slane %v1974_v17, 4  ;;  %v4921_v17 = vrot.slane %v4288_v50, 4  ;;  %s2959_s11 = spop %2958 }
 0x249   : > { %1831 = vrot.lane.b32.xlu0 %v1815_v60, %s4911_s9  ;;  %v1915_v60 = vrot.slane %v4273_v20, 3  ;;  %v4316_v24 = vmul.f32 %v4007_v16, %v1959_v40  ;;  %v1971_v19 = vmul.f32 %v4011_v10, %v1959_v40 }
 0x24b   : > { %v1997_v3 = vrot.slane %v4316_v24, 4  ;;  %v1998_v35 = vrot.slane %v1971_v19, 4  ;;  %v1918_v27 = vsel %vm1530_vm2, %v1915_v60, %v1917_v51 }
 0x24c   : > { %1837 = vrot.lane.b32.xlu1 %v1822_v18, %s4911_s9  ;;  %v1965_v18 = vstv %s4264_s29 }
 0x24d   : > { %1835 = vrot.lane.b32.xlu0 %v1820_v52, %s4911_s9  ;;  %v1972_v52 = vmul.f32 %v4015_v28, %v1959_v40  ;;  %v1976_v34 = vmul.f32 %v4028_v58, %v1965_v18  ;;  %v1977_v39 = vmul.f32 %v4033_v4, %v1965_v18  ;;  %v1978_v20 = vmul.f32 %v4070_v32, %v1965_v18 }
 0x24e   : > { %v2073_v40 = vrot.slane %v2049_v7, 4  ;;  %v2002_v18 = vrot.slane %v1973_v56, 4  ;;  %v2055_v56 = vmul.f32 %v4335_v43, %v2043_v49 }
 0x24f   : > { %v2000_v24 = vrot.slane %v1972_v52, 4  ;;  %v2007_v7 = vrot.slane %v1976_v34, 4  ;;  %v2008_v9 = vrot.slane %v1977_v39, 4  ;;  %v4923_v34 = vmov %v4921_v17 }
 0x250   : > { %1921 = vrot.lane.b32.xlu1 %v1903_v54, %s4912_s8  ;;  %v1975_v54 = vmul.f32 %v4060_v33, %v1962_v61  ;;  %v2075_v61 = vrot.slane %v2050_v47, 4  ;;  %v2080_v47 = vrot.slane %v2053_v11, 4  ;;  %v4924_v11 = vrot.slane %v4282_v36, 4 }
 0x251   : > { %1919 = vrot.lane.b32.xlu0 %v1901_v37, %s4912_s8 }
 0x252   : > { %v4311_v2 = vpop.permute.xlu1 %1172  ;;  %v2005_v26 = vrot.slane %v1975_v54, 4  ;;  %v2076_v51 = vsel %vm1991_vm3, %v2073_v40, %v2075_v61  ;;  %v4368_v54 = vsel %vm1991_vm3, %v4921_v17, %v1995_v8  ;;  %v4375_v39 = vsel %vm1991_vm3, %v4924_v11, %v4923_v34  ;;  %v4935_v11 = vld [vmem:[#allocation6_spill] sm:$0xff] }
 0x253   : > { %v4319_v12 = vpop.permute.xlu0 %1170  ;;  %4922 = vst [vmem:[#allocation14_spill] sm:$0xff] %v4368_v54  ;;  %4925 = vst [vmem:[#allocation15_spill] sm:$0xff] %v4375_v39  ;;  %v4389_v8 = vsel %vm1991_vm3, %v2002_v18, %v2003_v1 }
 0x254   : > { %1925 = vrot.lane.b32.xlu1 %v1908_v62, %s4912_s8  ;;  %v2051_v62 = vmul.f32 %v4007_v16, %v2040_v0  ;;  %4930 = vst [vmem:[#allocation20_spill] sm:$0xff] %v4389_v8 }
 0x255   : > { %1923 = vrot.lane.b32.xlu0 %v1906_v30, %s4912_s8  ;;  %v2052_v30 = vmul.f32 %v4011_v10, %v2040_v0  ;;  %v1916_v10 = vsel %vm1530_vm2, %v1914_v23, %v1915_v60  ;;  %v2054_v0 = vmul.f32 %v4331_v45, %v2043_v49  ;;  %v2056_v23 = vmul.f32 %v4060_v33, %v2043_v49 }
 0x256   : > { %v4339_v38 = vpop.permute.xlu1 %1176  ;;  %v2077_v52 = vrot.slane %v2051_v62, 4  ;;  %v2046_v60 = vstv %s2957_s6  ;;  %v4383_v49 = vsel %vm1991_vm3, %v1997_v3, %v1998_v35  ;;  %v4386_v33 = vsel %vm1991_vm3, %v2003_v1, %v2005_v26 }
 0x257   : > { %v4345_v37 = vpop.permute.xlu0 %1174  ;;  %v2078_v28 = vrot.slane %v2052_v30, 4  ;;  %4928 = vst [vmem:[#allocation18_spill] sm:$0xff] %v4383_v49  ;;  %4929 = vst [vmem:[#allocation19_spill] sm:$0xff] %v4386_v33  ;;  %v430_v62 = vadd.f32 %v3752_v21, %v4291_v22  ;;  %v499_v3 = vadd.f32 %v3787_v13, %v4294_v31  ;;  %v1043_v30 = vstv %s4001_s21  ;;  %s2961_s21 = spop %2960 }
 0x258   : > { %1929 = vrot.lane.b32.xlu1 %v1913_v53, %s4912_s8  ;;  %v2010_v53 = vrot.slane %v1978_v20, 4  ;;  %v2058_v61 = vmul.f32 %v4033_v4, %v2046_v60  ;;  %v2082_v21 = vrot.slane %v2054_v0, 4  ;;  %v2057_v31 = vmul.f32 %v4028_v58, %v2046_v60  ;;  %s2963_s30 = spop %2962 }
 0x259   : > { %1927 = vrot.lane.b32.xlu0 %v1911_v59, %s4912_s8  ;;  %v2074_v59 = vsel %vm1991_vm3, %v2072_v5, %v2073_v40  ;;  %v4380_v5 = vsel %vm1991_vm3, %v1998_v35, %v2000_v24  ;;  %v4397_v40 = vsel %vm1991_vm3, %v2007_v7, %v2008_v9  ;;  %v2081_v1 = vsel %vm1991_vm3, %v2078_v28, %v2080_v47 }
 0x25a   : > { %v4353_v16 = vpop.permute.xlu1 %1180  ;;  %4927 = vst [vmem:[#allocation17_spill] sm:$0xff] %v4380_v5  ;;  %v4394_v36 = vsel %vm1991_vm3, %v2008_v9, %v2010_v53  ;;  %4933 = vst [vmem:[#allocation23_spill] sm:$0xff] %v4397_v40  ;;  %v2083_v35 = vrot.slane %v2055_v56, 4  ;;  %v2085_v24 = vrot.slane %v2056_v23, 4  ;;  %v2059_v9 = vmul.f32 %v4070_v32, %v2046_v60  ;;  %v4934_v23 = vld [vmem:[#allocation5_spill] sm:$0xff]  ;;  %v4512_v40 = vld [vmem:[%s3358_s27 + $0x50] sm:$0xff] }
 0x25b   : > { %v4356_v19 = vpop.permute.xlu0 %1178  ;;  %4932 = vst [vmem:[#allocation22_spill] sm:$0xff] %v4394_v36  ;;  %v498_v18 = vadd.f32 %v3789_v14, %v430_v62  ;;  %v2079_v13 = vsel %vm1991_vm3, %v2077_v52, %v2078_v28  ;;  %v1055_v53 = vmul.f32 %v4033_v4, %v1043_v30  ;;  %v2133_v14 = vstv %s2959_s11  ;;  %s3195_s11 = smov [#allocation2]  }
 0x25c   : > { %1933 = vrot.lane.b32.xlu1 %v1918_v27, %s4912_s8  ;;  %v567_v27 = vadd.f32 %v3831_v46, %v499_v3  ;;  %v2088_v52 = vrot.slane %v2058_v61, 4  ;;  %v2090_v28 = vrot.slane %v2059_v9, 4  ;;  %v2086_v46 = vsel %vm1991_vm3, %v2083_v35, %v2085_v24  ;;  %v4441_v24 = vld [vmem:[%s3358_s27 + $0x20] sm:$0xff] }
 0x25d   : > { %1931 = vrot.lane.b32.xlu0 %v1916_v10, %s4912_s8  ;;  %v566_v7 = vadd.f32 %v3833_v44, %v498_v18  ;;  %v1054_v10 = vmul.f32 %v4028_v58, %v1043_v30  ;;  %v2087_v47 = vrot.slane %v2057_v31, 4  ;;  %v2084_v44 = vsel %vm1991_vm3, %v2082_v21, %v2083_v35  ;;  %4937 = vst [vmem:[#allocation5_spill] sm:$0xff] %v4441_v24  ;;  %v4448_v31 = vld [vmem:[%s3358_s27 + $0x28] sm:$0xf] }
 0x25e   : > { %v4377_v20 = vpop.permute.xlu1 %1184  ;;  %v644_v58 = vadd.f32 %v3629_v6, %v567_v27  ;;  %v2145_v4 = vmul.f32 %v4285_v48, %v2133_v14  ;;  %v2146_v0 = vmul.f32 %v4043_v29, %v2133_v14  ;;  %v2136_v56 = vstv %s2961_s21  ;;  %s3115_s21 = sshll.u32 %s3195_s11, 4  ;;  %s3116_s21 = int_to_ptr.vmem [resolvable:$false] %s3115_s21 }
 0x25f   : > { %4926 = vst [vmem:[#allocation16_spill] sm:$0xff] %v4377_v20  ;;  %v4391_v50 = vpop.permute.xlu0 %1182  ;;  %v643_v60 = vadd.f32 %v4934_v23, %v566_v7  ;;  %v1085_v17 = vrot.slane %v1054_v10, 2  ;;  %v2144_v34 = vmul.f32 %v4244_v63, %v2133_v14  ;;  %v1086_v62 = vrot.slane %v1055_v53, 2  ;;  %v4938_v53 = vld [vmem:[#allocation8_spill] sm:$0xff] }
 0x260   : > { %4931 = vst [vmem:[#allocation21_spill] sm:$0xff] %v4391_v50  ;;  %2094 = vrot.lane.b32.xlu1 %v2076_v51, %s3189_s28  ;;  %v740_v6 = vadd.f32 %v4935_v11, %v644_v58  ;;  %v2091_v29 = vsel %vm1991_vm3, %v2088_v52, %v2090_v28  ;;  %v1495_v35 = vstv %s4112_s7  ;;  %v2148_v61 = vmul.f32 %v4441_v24, %v2136_v56  ;;  %s2965_s7 = spop %2964 }
 0x261   : > { %2092 = vrot.lane.b32.xlu0 %v2074_v59, %s3189_s28  ;;  %v1056_v59 = vmul.f32 %v4070_v32, %v1043_v30  ;;  %v4936_v30 = vld [vmem:[#allocation7_spill] sm:$0xff]  ;;  %v2089_v18 = vsel %vm1991_vm3, %v2087_v47, %v2088_v52  ;;  %v2169_v21 = vrot.slane %v2145_v4, 4  ;;  %v2149_v27 = vmul.f32 %v4448_v31, %v2136_v56 }
 0x262   : > { %v4410_v22 = vpop.permute.xlu1 %1268  ;;  %v2139_v7 = vstv %s2963_s30  ;;  %v836_v14 = vadd.f32 %v4938_v53, %v740_v6  ;;  %v4461_v47 = vmul.f32 %v4244_v63, %v1495_v35  ;;  %v4467_v4 = vsel %vm1069_vm1, %v1085_v17, %v1086_v62  ;;  %s3117_s30 = scalar_lea.vmem %s3116_s21, 2048 }
 0x263   : > { %v4415_v26 = vpop.permute.xlu0 %1266  ;;  %v1088_v3 = vrot.slane %v1056_v59, 2  ;;  %v4939_v59 = vld [vmem:[#allocation9_spill] sm:$0xff]  ;;  %v2151_v11 = vmul.f32 %v4335_v43, %v2139_v7  ;;  %v2150_v53 = vmul.f32 %v4331_v45, %v2139_v7 }
 0x264   : > { %2098 = vrot.lane.b32.xlu1 %v2081_v1, %s3189_s28  ;;  %v739_v1 = vadd.f32 %v4936_v30, %v643_v60  ;;  %v4941_v60 = vld [vmem:[#allocation11_spill] sm:$0xff]  ;;  %v4481_v30 = vld [vmem:[%s3358_s27 + $0x40] sm:$0xf]  ;;  %4945 = vst [vmem:[#allocation9_spill] sm:$0xff] %v4512_v40 }
 0x265   : > { %2096 = vrot.lane.b32.xlu0 %v2079_v13, %s3189_s28  ;;  %v2171_v13 = vrot.slane %v2146_v0, 4  ;;  %v4464_v58 = vsel %vm1069_vm1, %v1086_v62, %v1088_v3  ;;  %v4940_v0 = vld [vmem:[#allocation10_spill] sm:$0xff]  ;;  %v2174_v3 = vrot.slane %v2148_v61, 4  ;;  %v2152_v17 = vmul.f32 %v4481_v30, %v2139_v7 }
 0x266   : > { %v4424_v51 = vpop.permute.xlu1 %1272  ;;  %v835_v28 = vadd.f32 %v4939_v59, %v739_v1  ;;  %v4471_v23 = vadd.f32 %v4940_v0, %v836_v14  ;;  %v2142_v14 = vstv %s2965_s7  ;;  %v4494_v59 = vld [vmem:[%s3358_s27 + $0x10] sm:$0xf]  ;;  %v2179_v0 = vrot.slane %v2151_v11, 4  ;;  %v4526_v11 = vld [vmem:[%s3358_s27 + $0x48] sm:$0xff] }
 0x267   : > { %v4430_v32 = vpop.permute.xlu0 %1270  ;;  %v2172_v1 = vsel %vm1991_vm3, %v2169_v21, %v2171_v13  ;;  %v4516_v13 = vld [vmem:[%s3358_s27 + $0x58] sm:$0xf]  ;;  %v2178_v49 = vrot.slane %v2150_v53, 4 }
 0x268   : > { %2102 = vrot.lane.b32.xlu1 %v2086_v46, %s3189_s28  ;;  %v2168_v46 = vrot.slane %v2144_v34, 4  ;;  %v4474_v34 = vadd.f32 %v4941_v60, %v835_v28  ;;  %v4497_v28 = vmul.f32 %v4494_v59, %v1495_v35  ;;  %v2155_v36 = vmul.f32 %v4516_v13, %v2142_v14 }
 0x269   : > { %2100 = vrot.lane.b32.xlu0 %v2084_v44, %s3189_s28  ;;  %v4456_v44 = vld [vmem:[%s3358_s27 + $0x18] sm:$0xff]  ;;  %v2180_v50 = vsel %vm1991_vm3, %v2178_v49, %v2179_v0 }
 0x26a   : > { %v4444_v9 = vpop.permute.xlu1 %1276  ;;  %v2147_v52 = vmul.f32 %v4456_v44, %v2136_v56  ;;  %v1498_v56 = vstv %s4119_s18  ;;  %v2170_v61 = vsel %vm1991_vm3, %v2168_v46, %v2169_v21  ;;  %v1501_v21 = vstv %s4123_s23 }
 0x26b   : > { %v4451_v10 = vpop.permute.xlu0 %1274  ;;  %v4505_v7 = vmul.f32 %v4441_v24, %v1498_v56  ;;  %v1504_v46 = vstv %s4130_s19  ;;  %v4523_v33 = vmul.f32 %v4448_v31, %v1498_v56  ;;  %v2186_v39 = vrot.slane %v2155_v36, 4 }
 0x26c   : > { %2106 = vrot.lane.b32.xlu1 %v2091_v29, %s3189_s28  ;;  %v2176_v29 = vrot.slane %v2149_v27, 4  ;;  %v4491_v27 = vmul.f32 %v4285_v48, %v1495_v35  ;;  %v2154_v35 = vmul.f32 %v4512_v40, %v2142_v14  ;;  %v4555_v53 = vmul.f32 %v4512_v40, %v1504_v46 }
 0x26d   : > { %2104 = vrot.lane.b32.xlu0 %v2089_v18, %s3189_s28  ;;  %v2173_v18 = vrot.slane %v2147_v52, 4  ;;  %v4501_v52 = vmul.f32 %v4456_v44, %v1498_v56  ;;  %s2967_s28 = spop %2966  ;;  %v4537_v56 = vmul.f32 %v4335_v43, %v1501_v21  ;;  %v4562_v36 = vmul.f32 %v4516_v13, %v1504_v46 }
 0x26e   : > { %v4478_v6 = vpop.permute.xlu1 %1280  ;;  %s2969_s18 = spop %2968  ;;  %v2229_v54 = vstv %s2967_s28 }
 0x26f   : > { %4942 = vst [vmem:[#allocation6_spill] sm:$0xff] %v4478_v6  ;;  %v4484_v62 = vpop.permute.xlu0 %1278  ;;  %4944 = vst [vmem:[#allocation8_spill] sm:$0xff] %v4501_v52  ;;  %v2175_v5 = vsel %vm1991_vm3, %v2173_v18, %v2174_v3  ;;  %v2232_v20 = vstv %s2969_s18  ;;  %s2971_s23 = spop %2970  ;;  %v4571_v49 = vmul.f32 %v4244_v63, %v2229_v54  ;;  %v4577_v52 = vmul.f32 %v4285_v48, %v2229_v54 }
 0x270   : > { %4943 = vst [vmem:[#allocation7_spill] sm:$0xff] %v4484_v62  ;;  %2190 = vrot.lane.b32.xlu1 %v2172_v1, %s4910_s10  ;;  %v2181_v1 = vrot.slane %v2152_v17, 4  ;;  %v2153_v17 = vmul.f32 %v4526_v11, %v2142_v14  ;;  %v4534_v62 = vmul.f32 %v4331_v45, %v1501_v21  ;;  %v4543_v14 = vmul.f32 %v4481_v30, %v1501_v21  ;;  %s2973_s19 = spop %2972 }
 0x271   : > { %2188 = vrot.lane.b32.xlu0 %v2170_v61, %s4910_s10  ;;  %v2177_v61 = vsel %vm1991_vm3, %v2174_v3, %v2176_v29  ;;  %v4546_v3 = vmul.f32 %v4526_v11, %v1504_v46  ;;  %v1195_v29 = vadd.f32 %v4311_v2, %v3980_v55  ;;  %v2771_v2 = vld [vmem:[%s4894_s2] ss:$0 sm:$0xff]  ;;  %s2975_s7 = spop %2974 }
 0x272   : > { %v4509_v60 = vpop.permute.xlu1 %1364  ;;  %v2183_v21 = vrot.slane %v2153_v17, 4  ;;  %v1027_v17 = vadd.f32 %v4296_v42, %v4474_v34  ;;  %v4586_v42 = vmul.f32 %v4456_v44, %v2232_v20  ;;  %v2235_v34 = vstv %s2971_s23  ;;  %s2977_s28 = spop %2976 }
 0x273   : > { %v4519_v8 = vpop.permute.xlu0 %1362  ;;  %s2979_s18 = spop %2978 }
 0x274   : > { %2194 = vrot.lane.b32.xlu1 %v2177_v61, %s4910_s10  ;;  %v2184_v61 = vrot.slane %v2154_v35, 4  ;;  %s2981_s23 = spop %2980 }
 0x275   : > { %2192 = vrot.lane.b32.xlu0 %v2175_v5, %s4910_s10  ;;  %v2182_v5 = vsel %vm1991_vm3, %v2179_v0, %v2181_v1  ;;  %v1028_v1 = vadd.f32 %v4278_v15, %v4471_v23  ;;  %v4589_v23 = vmul.f32 %v4441_v24, %v2232_v20  ;;  %v2772_v24 = vld [vmem:[%s4894_s2 + $0x1] ss:$0 sm:$0xff] }
 0x276   : > { %v4548_v18 = vpop.permute.xlu1 %1368  ;;  %v2187_v15 = vsel %vm1991_vm3, %v2184_v61, %v2186_v39  ;;  %v2185_v46 = vsel %vm1991_vm3, %v2183_v21, %v2184_v61  ;;  %v4598_v39 = vmul.f32 %v4448_v31, %v2232_v20  ;;  %v4608_v21 = vadd.f32 %v4467_v4, %v1027_v17 }
 0x277   : > { %v4550_v6 = vpop.permute.xlu0 %1366  ;;  %v1105_v61 = vadd.f32 %v4464_v58, %v1028_v1  ;;  %v1291_v20 = vadd.f32 %v4410_v22, %v1195_v29  ;;  %v2269_v1 = vrot.slane %v4586_v42, 4  ;;  %v1197_v22 = vadd.f32 %v4339_v38, %v3988_v25 }
 0x278   : > { %2198 = vrot.lane.b32.xlu1 %v2182_v5, %s4910_s10  ;;  %v2264_v5 = vrot.slane %v4571_v49, 4  ;;  %v4631_v29 = vmul.f32 %v4335_v43, %v2235_v34  ;;  %v4947_v17 = vrot.slane %v4491_v27, 3 }
 0x279   : > { %2196 = vrot.lane.b32.xlu0 %v2180_v50, %s4910_s10  ;;  %v4580_v50 = vmul.f32 %v4494_v59, %v2229_v54  ;;  %v4619_v54 = vmul.f32 %v4331_v45, %v2235_v34  ;;  %v1387_v49 = vadd.f32 %v4509_v60, %v1291_v20  ;;  %v2774_v60 = vld [vmem:[%s4894_s2 + $0x3] ss:$0 sm:$0xff] }
 0x27a   : > { %v4573_v0 = vpop.permute.xlu1 %1372 }
 0x27b   : > { %v4582_v35 = vpop.permute.xlu0 %1370  ;;  %v2267_v4 = vrot.slane %v4580_v50, 4  ;;  %v1196_v50 = vadd.f32 %v4345_v37, %v3990_v57 }
 0x27c   : > { %2202 = vrot.lane.b32.xlu1 %v2187_v15, %s4910_s10  ;;  %v1194_v15 = vadd.f32 %v4319_v12, %v3982_v41  ;;  %v2238_v41 = vstv %s2973_s19 }
 0x27d   : > { %2200 = vrot.lane.b32.xlu0 %v2185_v46, %s4910_s10  ;;  %v2265_v46 = vrot.slane %v4577_v52, 4  ;;  %v2272_v52 = vrot.slane %v4598_v39, 4  ;;  %v4644_v38 = vmul.f32 %v4526_v11, %v2238_v41  ;;  %v1293_v39 = vadd.f32 %v4424_v51, %v1197_v22  ;;  %v4948_v22 = vld [vmem:[#allocation13_spill] sm:$0xff] }
 0x27e   : > { %v4611_v55 = vpop.permute.xlu1 %1376  ;;  %v1290_v58 = vadd.f32 %v4415_v26, %v1194_v15  ;;  %v2773_v26 = vld [vmem:[%s4894_s2 + $0x2] ss:$0 sm:$0xff]  ;;  %v1199_v15 = vadd.f32 %v4353_v16, %v4948_v22 }
 0x27f   : > { %v4621_v12 = vpop.permute.xlu0 %1374  ;;  %v2266_v27 = vsel %vm1991_vm3, %v2264_v5, %v2265_v46 }
 0x280   : > { %2437 = vperm.xlu1 %3046, %v2772_v24   ;;  %v4640_v24 = vmul.f32 %v4481_v30, %v2235_v34  ;;  %v1386_v25 = vadd.f32 %v4519_v8, %v1290_v58  ;;  %v1292_v8 = vadd.f32 %v4430_v32, %v1196_v50  ;;  %v4656_v34 = vmul.f32 %v4516_v13, %v2238_v41  ;;  %v4951_v50 = vld [vmem:[#allocation12_spill] sm:$0xff] }
 0x281   : > { %2433 = vperm.xlu0 %3045, %v2771_v2   ;;  %v4652_v2 = vmul.f32 %v4512_v40, %v2238_v41  ;;  %v4946_v58 = vrot.slane %v4497_v28, 3  ;;  %v1389_v40 = vadd.f32 %v4548_v18, %v1293_v39  ;;  %v4949_v32 = vmov %v4947_v17 }
 0x282   : > { %v1461_v42 = vpop.permute.xlu1 %1460  ;;  %v4950_v41 = vrot.slane %v4461_v47, 3  ;;  %v1198_v28 = vadd.f32 %v4356_v19, %v4951_v50  ;;  %v1295_v16 = vadd.f32 %v4444_v9, %v1199_v15  ;;  %v2275_v18 = vrot.slane %v4631_v29, 4  ;;  %v4954_v9 = vld [vmem:[#allocation16_spill] sm:$0xff] }
 0x283   : > { %v1483_v57 = vadd.f32 %v1461_v42, %v1387_v49  ;;  %v1459_v37 = vpop.permute.xlu0 %1458  ;;  %v1535_v51 = vsel %vm1530_vm2, %v4947_v17, %v4946_v58  ;;  %v1388_v17 = vadd.f32 %v4550_v6, %v1292_v8  ;;  %v2268_v19 = vsel %vm1991_vm3, %v2265_v46, %v2267_v4  ;;  %v4956_v29 = vld [vmem:[#allocation8_spill] sm:$0xff] }
 0x284   : > { %v1482_v20 = vadd.f32 %v1459_v37, %v1386_v25  ;;  %2441 = vperm.xlu1 %3046, %v2773_v26   ;;  %v1533_v26 = vsel %vm1530_vm2, %v4950_v41, %v4949_v32  ;;  %v2325_v25 = vstv %s2975_s7  ;;  %v1294_v47 = vadd.f32 %v4451_v10, %v1198_v28 }
 0x285   : > { %2445 = vperm.xlu0 %3045, %v2774_v60   ;;  %v4666_v49 = vadd.f32 %v1535_v51, %v1483_v57  ;;  %v4952_v6 = vrot.slane %v4523_v33, 3  ;;  %v4953_v8 = vrot.slane %v4505_v7, 3  ;;  %v1201_v15 = vadd.f32 %v4954_v9, %v1105_v61  ;;  %v4958_v33 = vld [vmem:[#allocation21_spill] sm:$0xff] }
 0x286   : > { %v1465_v42 = vpop.permute.xlu1 %1464  ;;  %v4676_v37 = vadd.f32 %v1533_v26, %v1482_v20  ;;  %v4957_v58 = vrot.slane %v4956_v29, 3  ;;  %v1200_v4 = vadd.f32 %v4958_v33, %v4608_v21  ;;  %v2277_v51 = vrot.slane %v4640_v24, 4 }
 0x287   : > { %v1485_v60 = vadd.f32 %v1465_v42, %v1389_v40  ;;  %v1463_v39 = vpop.permute.xlu0 %1462  ;;  %v1540_v20 = vsel %vm1530_vm2, %v4953_v8, %v4952_v6  ;;  %v1391_v40 = vadd.f32 %v4573_v0, %v1295_v16  ;;  %v4955_v10 = vmov %v4953_v8  ;;  %v4959_v0 = vld [vmem:[#allocation6_spill] sm:$0xff]  ;;  %v4961_v42 = vld [vmem:[#allocation7_spill] sm:$0xff] }
 0x288   : > { %v1484_v57 = vadd.f32 %v1463_v39, %v1388_v17  ;;  %2284 = vrot.lane.b32.xlu1 %v2266_v27, %s4911_s9  ;;  %v1538_v46 = vsel %vm1530_vm2, %v4957_v58, %v4955_v10  ;;  %v1390_v22 = vadd.f32 %v4582_v35, %v1294_v47  ;;  %v1297_v41 = vadd.f32 %v4959_v0, %v1201_v15 }
 0x289   : > { %2286 = vrot.lane.b32.xlu0 %v2268_v19, %s4911_s9  ;;  %v4692_v5 = vadd.f32 %v1540_v20, %v1485_v60  ;;  %v2279_v26 = vrot.slane %v4644_v38, 4  ;;  %v4960_v28 = vrot.slane %v4589_v23, 4  ;;  %v1296_v16 = vadd.f32 %v4961_v42, %v1200_v4 }
 0x28a   : > { %v1469_v61 = vpop.permute.xlu1 %1468  ;;  %v4703_v32 = vadd.f32 %v1538_v46, %v1484_v57  ;;  %v4963_v60 = vrot.slane %v4543_v14, 3  ;;  %v4964_v38 = vrot.slane %v4537_v56, 3  ;;  %v2280_v27 = vrot.slane %v4652_v2, 4 }
 0x28b   : > { %v1487_v50 = vadd.f32 %v1469_v61, %v1391_v40  ;;  %v1467_v7 = vpop.permute.xlu0 %1466  ;;  %v2271_v17 = vsel %vm1991_vm3, %v2269_v1, %v4960_v28  ;;  %v4962_v24 = vmov %v4960_v28  ;;  %v1393_v1 = vadd.f32 %v4611_v55, %v1297_v41 }
 0x28c   : > { %v1486_v21 = vadd.f32 %v1467_v7, %v1390_v22  ;;  %v2273_v35 = vsel %vm1991_vm3, %v4962_v24, %v2272_v52  ;;  %2288 = vrot.lane.b32.xlu1 %v2271_v17, %s4911_s9  ;;  %v1545_v39 = vsel %vm1530_vm2, %v4964_v38, %v4963_v60  ;;  %v4965_v57 = vmov %v4964_v38  ;;  %v4972_v22 = vld [vmem:[#allocation5_spill] sm:$0xff] }
 0x28d   : > { %2290 = vrot.lane.b32.xlu0 %v2273_v35, %s4911_s9  ;;  %v1564_v47 = vadd.f32 %v1545_v39, %v1487_v50  ;;  %v4966_v23 = vrot.slane %v4534_v62, 3  ;;  %v2282_v19 = vrot.slane %v4656_v34, 4  ;;  %v2336_v14 = vmul.f32 %v4244_v63, %v2325_v25 }
 0x28e   : > { %v1392_v6 = vadd.f32 %v4621_v12, %v1296_v16  ;;  %v1473_v8 = vpop.permute.xlu1 %1472  ;;  %v2337_v2 = vmul.f32 %v4285_v48, %v2325_v25  ;;  %v2328_v55 = vstv %s2977_s28  ;;  %v4967_v56 = vrot.slane %v4619_v54, 4 }
 0x28f   : > { %v1543_v52 = vsel %vm1530_vm2, %v4966_v23, %v4965_v57  ;;  %v1489_v9 = vadd.f32 %v1473_v8, %v1393_v1  ;;  %v1471_v15 = vpop.permute.xlu0 %1470  ;;  %v2338_v40 = vmul.f32 %v4494_v59, %v2325_v25  ;;  %v2278_v34 = vsel %vm1991_vm3, %v2275_v18, %v2277_v51  ;;  %v4973_v23 = vld [vmem:[#allocation9_spill] sm:$0xff] }
 0x290   : > { %v1563_v20 = vadd.f32 %v1543_v52, %v1486_v21  ;;  %v2276_v62 = vsel %vm1991_vm3, %v4967_v56, %v2275_v18  ;;  %v1488_v10 = vadd.f32 %v1471_v15, %v1392_v6  ;;  %v4968_v63 = vrot.slane %v4562_v36, 3 }
 0x291   : > { %2292 = vrot.lane.b32.xlu1 %v2276_v62, %s4911_s9  ;;  %v4969_v12 = vrot.slane %v4555_v53, 3  ;;  %2294 = vrot.lane.b32.xlu0 %v2278_v34, %s4911_s9  ;;  %v4971_v58 = vrot.slane %v4546_v3, 3  ;;  %v2360_v46 = vrot.slane %v2336_v14, 4  ;;  %v2339_v18 = vmul.f32 %v4456_v44, %v2328_v55 }
 0x292   : > { %v2331_v33 = vstv %s2979_s18  ;;  %v1634_v4 = vpop.permute.xlu1 %1633  ;;  %v2361_v36 = vrot.slane %v2337_v2, 4  ;;  %v2340_v61 = vmul.f32 %v4972_v22, %v2328_v55  ;;  %v2281_v50 = vsel %vm1991_vm3, %v2279_v26, %v2280_v27 }
 0x293   : > { %v1550_v48 = vsel %vm1530_vm2, %v4969_v12, %v4968_v63  ;;  %v4970_v54 = vmov %v4969_v12  ;;  %v1656_v0 = vadd.f32 %v1634_v4, %v4666_v49  ;;  %v1632_v41 = vpop.permute.xlu0 %1631  ;;  %v2363_v7 = vrot.slane %v2338_v40, 4 }
 0x294   : > { %v1566_v29 = vadd.f32 %v1550_v48, %v1489_v9  ;;  %v1548_v25 = vsel %vm1530_vm2, %v4971_v58, %v4970_v54  ;;  %v2341_v53 = vmul.f32 %v4448_v31, %v2328_v55  ;;  %v1655_v3 = vadd.f32 %v1632_v41, %v4676_v37 }
 0x295   : > { %v1565_v51 = vadd.f32 %v1548_v25, %v1488_v10  ;;  %v2283_v28 = vsel %vm1991_vm3, %v2280_v27, %v2282_v19  ;;  %2296 = vrot.lane.b32.xlu1 %v2281_v50, %s4911_s9  ;;  %v2365_v17 = vrot.slane %v2339_v18, 4  ;;  %v2342_v42 = vmul.f32 %v4331_v45, %v2331_v33 }
 0x296   : > { %2298 = vrot.lane.b32.xlu0 %v2283_v28, %s4911_s9  ;;  %v2343_v49 = vmul.f32 %v4335_v43, %v2331_v33  ;;  %v1638_v16 = vpop.permute.xlu1 %1637  ;;  %v2366_v21 = vrot.slane %v2340_v61, 4  ;;  %v2344_v26 = vmul.f32 %v4481_v30, %v2331_v33  ;;  %v2362_v37 = vsel %vm1991_vm3, %v2360_v46, %v2361_v36  ;;  %s3194_s9 = smov 2  }
 0x297   : > { %v1658_v24 = vadd.f32 %v1638_v16, %v4692_v5  ;;  %v1636_v35 = vpop.permute.xlu0 %1635  ;;  %v2368_v60 = vrot.slane %v2341_v53, 4  ;;  %v2334_v38 = vstv %s2981_s23  ;;  %v2364_v27 = vsel %vm1991_vm3, %v2361_v36, %v2363_v7 }
 0x298   : > { %v1657_v39 = vadd.f32 %v1636_v35, %v4703_v32  ;;  %v2370_v45 = vrot.slane %v2342_v42, 4  ;;  %v2371_v43 = vrot.slane %v2343_v49, 4  ;;  %v2345_v57 = vmul.f32 %v4526_v11, %v2334_v38 }
 0x299   : > { %2380 = vrot.lane.b32.xlu1 %v2362_v37, %s4912_s8  ;;  %v2346_v5 = vmul.f32 %v4973_v23, %v2334_v38  ;;  %v2367_v14 = vsel %vm1991_vm3, %v2365_v17, %v2366_v21  ;;  %v2373_v6 = vrot.slane %v2344_v26, 4  ;;  %v2347_v32 = vmul.f32 %v4516_v13, %v2334_v38 }
 0x29a   : > { %2382 = vrot.lane.b32.xlu0 %v2364_v27, %s4912_s8  ;;  %v1642_v1 = vpop.permute.xlu1 %1641  ;;  %v2369_v2 = vsel %vm1991_vm3, %v2366_v21, %v2368_v60  ;;  %v2375_v9 = vrot.slane %v2345_v57, 4  ;;  %v4974_v57 = vld [vmem:[#allocation14_spill] sm:$0xff] }
 0x29b   : > { %v1660_v52 = vadd.f32 %v1642_v1, %v1564_v47  ;;  %v1640_v19 = vpop.permute.xlu0 %1639  ;;  %v2376_v15 = vrot.slane %v2346_v5, 4  ;;  %v2372_v47 = vsel %vm1991_vm3, %v2370_v45, %v2371_v43  ;;  %v2378_v40 = vrot.slane %v2347_v32, 4 }
 0x29c   : > { %v1659_v8 = vadd.f32 %v1640_v19, %v1563_v20  ;;  %v2374_v34 = vsel %vm1991_vm3, %v2371_v43, %v2373_v6  ;;  %v4975_v19 = vld [vmem:[#allocation15_spill] sm:$0xff] }
 0x29d   : > { %2384 = vrot.lane.b32.xlu1 %v2367_v14, %s4912_s8  ;;  %v2377_v48 = vsel %vm1991_vm3, %v2375_v9, %v2376_v15 }
 0x29e   : > { %2386 = vrot.lane.b32.xlu0 %v2369_v2, %s4912_s8  ;;  %v1646_v55 = vpop.permute.xlu1 %1645  ;;  %v4976_v2 = vld [vmem:[#allocation17_spill] sm:$0xff] }
 0x29f   : > { %v1662_v56 = vadd.f32 %v1646_v55, %v1566_v29  ;;  %v1644_v62 = vpop.permute.xlu0 %1643  ;;  %v2379_v29 = vsel %vm1991_vm3, %v2376_v15, %v2378_v40  ;;  %v4977_v15 = vld [vmem:[#allocation18_spill] sm:$0xff] }
 0x2a0   : > { %v1661_v10 = vadd.f32 %v1644_v62, %v1565_v51 }
 0x2a1   : > { %2388 = vrot.lane.b32.xlu1 %v2372_v47, %s4912_s8 }
 0x2a2   : > { %2390 = vrot.lane.b32.xlu0 %v2374_v34, %s4912_s8  ;;  %v1730_v20 = vpop.permute.xlu1 %1729 }
 0x2a3   : > { %v1752_v63 = vadd.f32 %v1730_v20, %v1656_v0  ;;  %v1728_v12 = vpop.permute.xlu0 %1727 }
 0x2a4   : > { %v1751_v54 = vadd.f32 %v1728_v12, %v1655_v3 }
 0x2a5   : > { %2392 = vrot.lane.b32.xlu1 %v2377_v48, %s4912_s8 }
 0x2a6   : > { %2394 = vrot.lane.b32.xlu0 %v2379_v29, %s4912_s8  ;;  %v1734_v58 = vpop.permute.xlu1 %1733 }
 0x2a7   : > { %v1754_v25 = vadd.f32 %v1734_v58, %v1658_v24  ;;  %v1732_v46 = vpop.permute.xlu0 %1731  ;;  %v4980_v58 = vld [vmem:[#allocation22_spill] sm:$0xff] }
 0x2a8   : > { %v1753_v18 = vadd.f32 %v1732_v46, %v1657_v39 }
 0x2aa   : > { %v1738_v33 = vpop.permute.xlu1 %1737 }
 0x2ab   : > { %v1756_v4 = vadd.f32 %v1738_v33, %v1660_v52  ;;  %v1736_v51 = vpop.permute.xlu0 %1735 }
 0x2ac   : > { %v1755_v36 = vadd.f32 %v1736_v51, %v1659_v8 }
 0x2ae   : > { %v1742_v61 = vpop.permute.xlu1 %1741 }
 0x2af   : > { %v1758_v0 = vadd.f32 %v1742_v61, %v1662_v56  ;;  %v1740_v41 = vpop.permute.xlu0 %1739 }
 0x2b0   : > { %v1757_v50 = vadd.f32 %v1740_v41, %v1661_v10  ;;  %v4978_v10 = vld [vmem:[#allocation19_spill] sm:$0xff] }
 0x2b2   : > { %v1826_v7 = vpop.permute.xlu1 %1825 }
 0x2b3   : > { %v1848_v53 = vadd.f32 %v1826_v7, %v1752_v63  ;;  %v1824_v3 = vpop.permute.xlu0 %1823  ;;  %v4979_v63 = vld [vmem:[#allocation20_spill] sm:$0xff] }
 0x2b4   : > { %v1847_v28 = vadd.f32 %v1824_v3, %v1751_v54 }
 0x2b6   : > { %v1830_v17 = vpop.permute.xlu1 %1829 }
 0x2b7   : > { %v1850_v42 = vadd.f32 %v1830_v17, %v1754_v25  ;;  %v1828_v49 = vpop.permute.xlu0 %1827 }
 0x2b8   : > { %v1849_v16 = vadd.f32 %v1828_v49, %v1753_v18  ;;  %v4981_v18 = vld [vmem:[#allocation23_spill] sm:$0xff] }
 0x2ba   : > { %v1834_v21 = vpop.permute.xlu1 %1833 }
 0x2bb   : > { %v1852_v26 = vadd.f32 %v1834_v21, %v1756_v4  ;;  %v1832_v24 = vpop.permute.xlu0 %1831 }
 0x2bc   : > { %v1851_v35 = vadd.f32 %v1832_v24, %v1755_v36 }
 0x2be   : > { %v1838_v37 = vpop.permute.xlu1 %1837 }
 0x2bf   : > { %v1854_v60 = vadd.f32 %v1838_v37, %v1758_v0  ;;  %v1836_v38 = vpop.permute.xlu0 %1835 }
 0x2c0   : > { %v1853_v39 = vadd.f32 %v1836_v38, %v1757_v50 }
 0x2c2   : > { %v1922_v27 = vpop.permute.xlu1 %1921 }
 0x2c3   : > { %v1944_v45 = vadd.f32 %v1922_v27, %v1848_v53  ;;  %v1920_v43 = vpop.permute.xlu0 %1919 }
 0x2c4   : > { %v1943_v1 = vadd.f32 %v1920_v43, %v1847_v28 }
 0x2c5   : > { %v2021_v5 = vadd.f32 %v4974_v57, %v1944_v45 }
 0x2c6   : > { %v1926_v52 = vpop.permute.xlu1 %1925  ;;  %v2020_v14 = vadd.f32 %v4975_v19, %v1943_v1 }
 0x2c7   : > { %v1946_v6 = vadd.f32 %v1926_v52, %v1850_v42  ;;  %v1924_v32 = vpop.permute.xlu0 %1923 }
 0x2c8   : > { %v1945_v8 = vadd.f32 %v1924_v32, %v1849_v16 }
 0x2c9   : > { %v2023_v55 = vadd.f32 %v4976_v2, %v1946_v6 }
 0x2ca   : > { %v1930_v9 = vpop.permute.xlu1 %1929  ;;  %v2022_v56 = vadd.f32 %v4977_v15, %v1945_v8 }
 0x2cb   : > { %v1948_v62 = vadd.f32 %v1930_v9, %v1852_v26  ;;  %v1928_v47 = vpop.permute.xlu0 %1927 }
 0x2cc   : > { %v1947_v40 = vadd.f32 %v1928_v47, %v1851_v35 }
 0x2cd   : > { %v2025_v34 = vadd.f32 %v4978_v10, %v1948_v62 }
 0x2ce   : > { %v1934_v20 = vpop.permute.xlu1 %1933  ;;  %v2024_v12 = vadd.f32 %v4979_v63, %v1947_v40 }
 0x2cf   : > { %v1950_v48 = vadd.f32 %v1934_v20, %v1854_v60  ;;  %v1932_v54 = vpop.permute.xlu0 %1931 }
 0x2d0   : > { %v1949_v29 = vadd.f32 %v1932_v54, %v1853_v39 }
 0x2d1   : > { %v2027_v25 = vadd.f32 %v4980_v58, %v1950_v48 }
 0x2d2   : > { %v2095_v46 = vpop.permute.xlu1 %2094  ;;  %v2026_v33 = vadd.f32 %v4981_v18, %v1949_v29 }
 0x2d3   : > { %v2093_v4 = vpop.permute.xlu0 %2092  ;;  %v2117_v1 = vadd.f32 %v2095_v46, %v2021_v5 }
 0x2d4   : > { %v2116_v43 = vadd.f32 %v2093_v4, %v2020_v14 }
 0x2d6   : > { %v2099_v51 = vpop.permute.xlu1 %2098 }
 0x2d7   : > { %v2097_v36 = vpop.permute.xlu0 %2096  ;;  %v2119_v2 = vadd.f32 %v2099_v51, %v2023_v55 }
 0x2d8   : > { %v2118_v32 = vadd.f32 %v2097_v36, %v2022_v56 }
 0x2da   : > { %v2103_v61 = vpop.permute.xlu1 %2102 }
 0x2db   : > { %v2101_v0 = vpop.permute.xlu0 %2100  ;;  %v2121_v29 = vadd.f32 %v2103_v61, %v2025_v34 }
 0x2dc   : > { %v2120_v63 = vadd.f32 %v2101_v0, %v2024_v12 }
 0x2de   : > { %v2107_v41 = vpop.permute.xlu1 %2106 }
 0x2df   : > { %v2105_v50 = vpop.permute.xlu0 %2104 }
 0x2e2   : > { %v2191_v7 = vpop.permute.xlu1 %2190 }
 0x2e3   : > { %v2189_v53 = vpop.permute.xlu0 %2188  ;;  %v2213_v6 = vadd.f32 %v2191_v7, %v2117_v1  ;;  %v2122_v7 = vadd.f32 %v2105_v50, %v2026_v33 }
 0x2e4   : > { %v2212_v52 = vadd.f32 %v2189_v53, %v2116_v43 }
 0x2e6   : > { %v2195_v3 = vpop.permute.xlu1 %2194 }
 0x2e7   : > { %v2193_v28 = vpop.permute.xlu0 %2192  ;;  %v2215_v10 = vadd.f32 %v2195_v3, %v2119_v2  ;;  %v2123_v3 = vadd.f32 %v2107_v41, %v2027_v25 }
 0x2e8   : > { %v2214_v62 = vadd.f32 %v2193_v28, %v2118_v32 }
 0x2ea   : > { %v2199_v17 = vpop.permute.xlu1 %2198 }
 0x2eb   : > { %v2197_v42 = vpop.permute.xlu0 %2196  ;;  %v2217_v36 = vadd.f32 %v2199_v17, %v2121_v29 }
 0x2ec   : > { %v2216_v46 = vadd.f32 %v2197_v42, %v2120_v63 }
 0x2ee   : > { %v2203_v49 = vpop.permute.xlu1 %2202 }
 0x2ef   : > { %v2201_v16 = vpop.permute.xlu0 %2200 }
 0x2f0   : > { %v2218_v34 = vadd.f32 %v2201_v16, %v2122_v7 }
 0x2fb   : > { %v2438_v21 = vpop.permute.xlu1 %2437 }
 0x2fc   : > { %v2434_v26 = vpop.permute.xlu0 %2433 }
 0x2ff   : > { %v2442_v24 = vpop.permute.xlu1 %2441 }
 0x300   : > { %v4790_v35 = vpop.permute.xlu0 %2445 }
 0x303   : > { %v2285_v37 = vpop.permute.xlu1 %2284 }
 0x304   : > { %v2287_v60 = vpop.permute.xlu0 %2286  ;;  %v2308_v8 = vadd.f32 %v2285_v37, %v2212_v52 }
 0x305   : > { %v2309_v9 = vadd.f32 %v2287_v60, %v2213_v6 }
 0x307   : > { %v2289_v38 = vpop.permute.xlu1 %2288 }
 0x308   : > { %v2291_v39 = vpop.permute.xlu0 %2290  ;;  %v2310_v48 = vadd.f32 %v2289_v38, %v2214_v62 }
 0x309   : > { %v2311_v14 = vadd.f32 %v2291_v39, %v2215_v10  ;;  %v2219_v39 = vadd.f32 %v2203_v49, %v2123_v3 }
 0x30b   : > { %v2293_v27 = vpop.permute.xlu1 %2292 }
 0x30c   : > { %v2295_v45 = vpop.permute.xlu0 %2294  ;;  %v2312_v53 = vadd.f32 %v2293_v27, %v2216_v46 }
 0x30d   : > { %v2313_v60 = vadd.f32 %v2295_v45, %v2217_v36 }
 0x30f   : > { %v2297_v57 = vpop.permute.xlu1 %2296 }
 0x310   : > { %v2299_v19 = vpop.permute.xlu0 %2298  ;;  %v2314_v1 = vadd.f32 %v2297_v57, %v2218_v34 }
 0x311   : > { %v2315_v50 = vadd.f32 %v2299_v19, %v2219_v39 }
 0x313   : > { %v2381_v15 = vpop.permute.xlu1 %2380 }
 0x314   : > { %v2404_v47 = vadd.f32 %v2381_v15, %v2308_v8  ;;  %v2383_v40 = vpop.permute.xlu0 %2382 }
 0x315   : > { %v2405_v20 = vadd.f32 %v2383_v40, %v2309_v9 }
 0x316   : > { %v2448_v54 = vadd.f32 %v2434_v26, %v2404_v47 }
 0x317   : > { %v2449_v5 = vadd.f32 %v2434_v26, %v2405_v20  ;;  %v2385_v58 = vpop.permute.xlu1 %2384 }
 0x318   : > { %v2456_v18 = vsub.f32 0.0, %v2448_v54  ;;  %v2406_v4 = vadd.f32 %v2385_v58, %v2310_v48  ;;  %v2387_v56 = vpop.permute.xlu0 %2386 }
 0x319   : > { %v2457_v55 = vsub.f32 0.0, %v2449_v5  ;;  %v2407_v51 = vadd.f32 %v2387_v56, %v2311_v14 }
 0x31a   : > { %v2464_v28 = vmul.f32 1.442695, %v2456_v18  ;;  %v2450_v37 = vadd.f32 %v2438_v21, %v2406_v4 }
 0x31b   : > { %v2466_v12 = vmul.f32 1.442695, %v2457_v55  ;;  %v2451_v0 = vadd.f32 %v2438_v21, %v2407_v51  ;;  %v2389_v38 = vpop.permute.xlu1 %2388 }
 0x31c   : > { %3047 = vpow2.f32 %v2464_v28  ;;  %v2458_v61 = vsub.f32 0.0, %v2450_v37  ;;  %v2408_v26 = vadd.f32 %v2389_v38, %v2312_v53  ;;  %v2391_v42 = vpop.permute.xlu0 %2390 }
 0x31d   : > { %3049 = vpow2.f32 %v2466_v12  ;;  %v2459_v43 = vsub.f32 0.0, %v2451_v0  ;;  %v2409_v17 = vadd.f32 %v2391_v42, %v2313_v60 }
 0x31e   : > { %v2468_v52 = vmul.f32 1.442695, %v2458_v61  ;;  %v2452_v33 = vadd.f32 %v2442_v24, %v2408_v26 }
 0x31f   : > { %v2470_v27 = vmul.f32 1.442695, %v2459_v43  ;;  %v2453_v6 = vadd.f32 %v2442_v24, %v2409_v17  ;;  %v2393_v25 = vpop.permute.xlu1 %2392 }
 0x320   : > { %3051 = vpow2.f32 %v2468_v52  ;;  %v2460_v41 = vsub.f32 0.0, %v2452_v33  ;;  %v2410_v21 = vadd.f32 %v2393_v25, %v2314_v1  ;;  %v2395_v45 = vpop.permute.xlu0 %2394  ;;  %v3107_v52 = vld [vmem:[%s3358_s27] sm:$0xff] }
 0x321   : > { %3053 = vpow2.f32 %v2470_v27  ;;  %v2461_v16 = vsub.f32 0.0, %v2453_v6  ;;  %v2411_v32 = vadd.f32 %v2395_v45, %v2315_v50  ;;  %v3108_v27 = vld [vmem:[%s3358_s27 + $0x8] sm:$0xff] }
 0x322   : > { %v2472_v8 = vmul.f32 1.442695, %v2460_v41  ;;  %v2454_v49 = vadd.f32 %v4790_v35, %v2410_v21 }
 0x323   : > { %v2474_v2 = vmul.f32 1.442695, %v2461_v16  ;;  %v2455_v9 = vadd.f32 %v4790_v35, %v2411_v32 }
 0x324   : > { %3055 = vpow2.f32 %v2472_v8  ;;  %v2462_v57 = vsub.f32 0.0, %v2454_v49 }
 0x325   : > { %3057 = vpow2.f32 %v2474_v2  ;;  %v2463_v19 = vsub.f32 0.0, %v2455_v9 }
 0x326   : > { %v2476_v15 = vmul.f32 1.442695, %v2462_v57 }
 0x327   : > { %v2478_v24 = vmul.f32 1.442695, %v2463_v19  ;;  %v3110_v19 = vld [vmem:[%s3358_s27 + $0x38] sm:$0xff] }
 0x328   : > { %3059 = vpow2.f32 %v2476_v15 }
 0x329   : > { %v3048_v62 = vpop.eup %3047  ;;  %3061 = vpow2.f32 %v2478_v24 }
 0x32a   : > { %v3050_v47 = vpop.eup %3049  ;;  %v2480_v40 = vadd.f32 1.0, %v3048_v62 }
 0x32b   : > { %v2481_v10 = vadd.f32 1.0, %v3050_v47 }
 0x32c   : > { %3063 = vrcp.f32 %v2480_v40 }
 0x32d   : > { %v3052_v20 = vpop.eup %3051  ;;  %3065 = vrcp.f32 %v2481_v10 }
 0x32e   : > { %v3054_v63 = vpop.eup %3053  ;;  %v2482_v48 = vadd.f32 1.0, %v3052_v20 }
 0x32f   : > { %v2483_v54 = vadd.f32 1.0, %v3054_v63 }
 0x330   : > { %3067 = vrcp.f32 %v2482_v48 }
 0x331   : > { %v3056_v35 = vpop.eup %3055  ;;  %3069 = vrcp.f32 %v2483_v54 }
 0x332   : > { %v3058_v29 = vpop.eup %3057  ;;  %v2484_v14 = vadd.f32 1.0, %v3056_v35 }
 0x333   : > { %v2485_v5 = vadd.f32 1.0, %v3058_v29 }
 0x334   : > { %3071 = vrcp.f32 %v2484_v14 }
 0x335   : > { %v3060_v58 = vpop.eup %3059  ;;  %3073 = vrcp.f32 %v2485_v5 }
 0x336   : > { %v3062_v46 = vpop.eup %3061  ;;  %v2486_v18 = vadd.f32 1.0, %v3060_v58 }
 0x337   : > { %v2487_v4 = vadd.f32 1.0, %v3062_v46 }
 0x338   : > { %3075 = vrcp.f32 %v2486_v18 }
 0x339   : > { %v3064_v56 = vpop.eup %3063  ;;  %3077 = vrcp.f32 %v2487_v4 }
 0x33a   : > { %v3066_v36 = vpop.eup %3065  ;;  %v2513_v55 = vrot.slane %v3064_v56, 6 }
 0x33b   : > { %v2514_v51 = vrot.slane %v3066_v36, 6 }
 0x33c   : > { %2525 = vrot.lane.b32.xlu1 %v2513_v55, %s3194_s9 }
 0x33d   : > { %v3068_v7 = vpop.eup %3067  ;;  %v2515_v53 = vsel %vm2512_vm4, %v2513_v55, %v2514_v51 }
 0x33e   : > { %v3070_v28 = vpop.eup %3069  ;;  %2527 = vrot.lane.b32.xlu0 %v2515_v53, %s3194_s9  ;;  %v2516_v37 = vrot.slane %v3068_v7, 6 }
 0x33f   : > { %v2517_v3 = vrot.slane %v3070_v28, 6 }
 0x340   : > { %2529 = vrot.lane.b32.xlu1 %v2514_v51, %s3194_s9 }
 0x341   : > { %v3072_v60 = vpop.eup %3071  ;;  %v2518_v12 = vsel %vm2512_vm4, %v2516_v37, %v2517_v3 }
 0x342   : > { %v3074_v0 = vpop.eup %3073  ;;  %2531 = vrot.lane.b32.xlu0 %v2516_v37, %s3194_s9  ;;  %v2519_v38 = vrot.slane %v3072_v60, 6 }
 0x343   : > { %v2520_v34 = vrot.slane %v3074_v0, 6 }
 0x344   : > { %2533 = vrot.lane.b32.xlu1 %v2518_v12, %s3194_s9 }
 0x345   : > { %v3076_v61 = vpop.eup %3075  ;;  %v2521_v26 = vsel %vm2512_vm4, %v2519_v38, %v2520_v34 }
 0x346   : > { %v3078_v42 = vpop.eup %3077  ;;  %2535 = vrot.lane.b32.xlu0 %v2517_v3, %s3194_s9  ;;  %v2522_v39 = vrot.slane %v3076_v61, 6 }
 0x347   : > { %v2523_v43 = vrot.slane %v3078_v42, 6 }
 0x348   : > { %2537 = vrot.lane.b32.xlu1 %v2519_v38, %s3194_s9 }
 0x349   : > { %v2524_v17 = vsel %vm2512_vm4, %v2522_v39, %v2523_v43 }
 0x34a   : > { %2539 = vrot.lane.b32.xlu0 %v2521_v26, %s3194_s9 }
 0x34c   : > { %2541 = vrot.lane.b32.xlu1 %v2520_v34, %s3194_s9 }
 0x34e   : > { %2543 = vrot.lane.b32.xlu0 %v2522_v39, %s3194_s9 }
 0x350   : > { %2545 = vrot.lane.b32.xlu1 %v2524_v17, %s3194_s9 }
 0x352   : > { %2547 = vrot.lane.b32.xlu0 %v2523_v43, %s3194_s9 }
 0x3ae   : > { %v2526_v1 = vpop.permute.xlu1 %2525 }
 0x3af   : > { %v2561_v33 = vmul.f32 %v3107_v52, %v2526_v1 }
 0x3b0   : > { %v2528_v50 = vpop.permute.xlu0 %2527 }
 0x3b1   : > { %v2562_v6 = vmul.f32 %v3108_v27, %v2528_v50  ;;  %2585 = vrot.lane.b32.xlu1 %v2561_v33, %s4910_s10 }
 0x3b2   : > { %v2530_v25 = vpop.permute.xlu1 %2529 }
 0x3b3   : > { %v2563_v41 = vmul.f32 %v4494_v59, %v2530_v25  ;;  %2587 = vrot.lane.b32.xlu0 %v2562_v6, %s4910_s10  ;;  %v3109_v59 = vld [vmem:[%s3358_s27 + $0x30] sm:$0xff]  ;;  %s218_s27 = sand.u32 1, %s3171_s13  }
 0x3b4   : > { %v2532_v21 = vpop.permute.xlu0 %2531  ;;  %s2769_s8 = sshll.u32 %s218_s27, 6 }
 0x3b5   : > { %v2564_v45 = vmul.f32 %v4456_v44, %v2532_v21  ;;  %2589 = vrot.lane.b32.xlu1 %v2563_v41, %s4910_s10  ;;  %s220_s19 = scalar_lea.vmem [#allocation2], %s2769_s8 }
 0x3b6   : > { %v2534_v16 = vpop.permute.xlu1 %2533  ;;  %s2653_s29 = sshll.u32 %s220_s19, 4  ;;  %s4841_s29 = int_to_ptr.vmem [resolvable:$true] %s2653_s29 }
 0x3b7   : > { %v2565_v32 = vmul.f32 %v4972_v22, %v2534_v16  ;;  %2591 = vrot.lane.b32.xlu0 %v2564_v45, %s4910_s10  ;;  %s3111_s6 = scalar_lea.vmem %s4841_s29, 1024  ;;  %p3118_p1 = scmp.lt.s32.totalorder %s4841_s29, %s3116_s21 }
 0x3b8   : > { %v2536_v8 = vpop.permute.xlu0 %2535  ;;  %p3112_p12 = scmp.ne.s32.totalorder %s4841_s29, %s3111_s6  ;;  %p3119_p2 = scmp.lt.s32.totalorder %s3117_s30, %s3111_s6 }
 0x3b9   : > { %v2566_v49 = vmul.f32 %v4448_v31, %v2536_v8  ;;  %2593 = vrot.lane.b32.xlu1 %v2565_v32, %s4910_s10 }
 0x3ba   : > { %v2538_v2 = vpop.permute.xlu1 %2537  ;;  %p3113_p13 = pnand %p3112_p12, %p3258_p4  ;;  %p3120_p3 = por %p3119_p2, %p3118_p1 }
 0x3bb   : > { %v2567_v9 = vmul.f32 %v3109_v59, %v2538_v2  ;;  %2595 = vrot.lane.b32.xlu0 %v2566_v49, %s4910_s10 }
 0x3bc   : > { %v2540_v57 = vpop.permute.xlu0 %2539  ;;  %p3114_p0 = pneg %p3113_p13 }
 0x3bd   : > { %v2568_v44 = vmul.f32 %v3110_v19, %v2540_v57  ;;  %2597 = vrot.lane.b32.xlu1 %v2567_v9, %s4910_s10 }
 0x3be   : > { %v2542_v22 = vpop.permute.xlu1 %2541  ;;  %p3121_p5 = pnand %p3120_p3, %p3114_p0 }
 0x3bf   : > { %v2569_v15 = vmul.f32 %v4481_v30, %v2542_v22  ;;  %2599 = vrot.lane.b32.xlu0 %v2568_v44, %s4910_s10 }
 0x3c0   : > { %v2544_v31 = vpop.permute.xlu0 %2543 }
 0x3c1   : > { %v2570_v24 = vmul.f32 %v4526_v11, %v2544_v31  ;;  %2601 = vrot.lane.b32.xlu1 %v2569_v15, %s4910_s10 }
 0x3c2   : > { %v2546_v62 = vpop.permute.xlu1 %2545 }
 0x3c3   : > { %v2571_v47 = vmul.f32 %v4973_v23, %v2546_v62  ;;  %2603 = vrot.lane.b32.xlu0 %v2570_v24, %s4910_s10 }
 0x3c4   : > { %v2548_v40 = vpop.permute.xlu0 %2547 }
 0x3c5   : > { %v2572_v10 = vmul.f32 %v4516_v13, %v2548_v40  ;;  %2605 = vrot.lane.b32.xlu1 %v2571_v47, %s4910_s10 }
 0x3c7   : > { %2607 = vrot.lane.b32.xlu0 %v2572_v10, %s4910_s10  ;;  %s2780_s10 = sshll.u32 %s3179_s15, 10  ;;  %s4847_s15 = scalar_lea.sflag [#allocation3], %s218_s27 }
 0x3c8   : > { %s4839_s5 = scalar_lea.hbm %s4895_s3, %s2780_s10 }
 0x423   : > { %v2586_v30 = vpop.permute.xlu1 %2585 }
 0x424   : > { %2622 = vst.msk [vmem:[%s220_s19 - $0x2] sm:$0xfc] %vm2621_vm5, %v2586_v30 }
 0x425   : > { %v2588_v11 = vpop.permute.xlu0 %2587 }
 0x426   : > { %2624 = vst.msk [vmem:[%s220_s19 + $0x6] sm:$0xff] %vm2623_vm6, %v2588_v11 }
 0x427   : > { %v2590_v23 = vpop.permute.xlu1 %2589 }
 0x428   : > { %2626 = vst.msk [vmem:[%s220_s19 + $0xe] sm:$0x3] %vm2625_vm7, %v2590_v23 }
 0x429   : > { %v2592_v13 = vpop.permute.xlu0 %2591 }
 0x42a   : > { %2627 = vst.msk [vmem:[%s220_s19 + $0xe] sm:$0xfc] %vm2621_vm5, %v2592_v13 }
 0x42b   : > { %v2594_v20 = vpop.permute.xlu1 %2593 }
 0x42c   : > { %2628 = vst.msk [vmem:[%s220_s19 + $0x16] sm:$0xff] %vm2623_vm6, %v2594_v20 }
 0x42d   : > { %v2596_v63 = vpop.permute.xlu0 %2595 }
 0x42e   : > { %2629 = vst.msk [vmem:[%s220_s19 + $0x1e] sm:$0x3] %vm2625_vm7, %v2596_v63 }
 0x42f   : > { %v2598_v48 = vpop.permute.xlu1 %2597 }
 0x430   : > { %2630 = vst.msk [vmem:[%s220_s19 + $0x1e] sm:$0xfc] %vm2621_vm5, %v2598_v48 }
 0x431   : > { %v2600_v54 = vpop.permute.xlu0 %2599 }
 0x432   : > { %2631 = vst.msk [vmem:[%s220_s19 + $0x26] sm:$0xff] %vm2623_vm6, %v2600_v54 }
 0x433   : > { %v2602_v35 = vpop.permute.xlu1 %2601 }
 0x434   : > { %2632 = vst.msk [vmem:[%s220_s19 + $0x2e] sm:$0x3] %vm2625_vm7, %v2602_v35 }
 0x435   : > { %v2604_v29 = vpop.permute.xlu0 %2603 }
 0x436   : > { %2633 = vst.msk [vmem:[%s220_s19 + $0x2e] sm:$0xfc] %vm2621_vm5, %v2604_v29 }
 0x437   : > { %v2606_v14 = vpop.permute.xlu1 %2605 }
 0x438   : > { %2634 = vst.msk [vmem:[%s220_s19 + $0x36] sm:$0xff] %vm2623_vm6, %v2606_v14 }
 0x439   : > { %v2608_v5 = vpop.permute.xlu0 %2607 }
 0x43a   : > { %2635 = vst.msk [vmem:[%s220_s19 + $0x3e] sm:$0x3] %vm2625_vm7, %v2608_v5 }
 0x43b   : > { %3124 = shalt.err (!%p3121_p5)
}
 0x43c   : > { %s3125_s7 = scalar_lea.hbm %s4839_s5, 1024  ;;  %s3129_s23 = scalar_lea.hbm %s4895_s3, 2048 }
 0x43d   : > { %p3126_p6 = scmp.ne.s32.totalorder %s4839_s5, %s3125_s7  ;;  %p3130_p10 = scmp.lt.s32.totalorder %s4839_s5, %s4895_s3 }
 0x43e   : > { %p3131_p11 = scmp.lt.s32.totalorder %s3129_s23, %s3125_s7 }
 0x43f   : > { %p3127_p7 = pnand %p3126_p6, %p3258_p4 }
 0x440   : > { %p3132_p12 = por %p3131_p11, %p3130_p10 }
 0x441   : > { %p3128_p9 = pneg %p3127_p7 }
 0x443   : > { %p3133_p13 = pnand %p3132_p12, %p3128_p9 }
 0x445   : > { %3136 = shalt.err (!%p3133_p13)
}
 0x446   : > { %s3196_s8 = smov 128   ;;  %s3197_s19 = smov 8  }
 0x447   : > { %2982 = dma.vmem_to_hbm [thread:$0]  (%p3258_p4), %s4841_s29, 1024, %s4839_s5, %s4847_s15, %s3196_s8, %s3196_s8, %s3197_s19  }
 0x448 PF: > { %p2988_p0 = scmp.ge.s32.totalorder %s3187_s17, 2  ;;  %s2668_s10 = sand.u32 1, %s3167_s12  }
 0x449   : > { %s2669_s26 = scalar_lea.sflag [#allocation3], %s2668_s10 }
 0x44a   : > { %p2985_p1 = pnand %p2988_p0, %p3265_p8 }
 0x44c   : > { %p2986_p2 = pneg %p2985_p1 }
 0x44e   : > { %3162 = dma.done.wait (%p2986_p2), %s2669_s26, 1024  }
 0x44f   : > { %3164 = vsyncadd (%p2986_p2), %s2669_s26, 4294966272  ;;  %s16_s17 = sadd.s32 1, %s3187_s17   ;;  %s4982_s12 = smov %s3171_s13 }
 0x450   : > { %p13_p3 = scmp.ge.s32.totalorder %s16_s17, 4   ;;  %s4983_s13 = smov %s3175_s14 }
 0x451   : > { %s4984_s14 = smov %s3271_s25  ;;  %s4985_s15 = smov %s3183_s16 }
 0x452   : > { %s4986_s16 = smov %s4988_s20  ;;  %15 = sbr.rel (!%p13_p3) target bundleno = 4 (0x4), region = 73 }
 0x457   :  { %2674 = vsyncpa [#allocation3], 1 }
 0x458   :  { %2676 = vsyncpa [#allocation3 + $0x1], 1 }

</bundles_post_ra>
